<compile_context>
chip_gen: v7x
topology: tpu7x:2x2x1
jax: 0.10.0
libtpu: 0.0.40
codegen_flags: <defaults>
</compile_context>

<pallas_src>
import functools

import jax
import jax.numpy as jnp
from jax.experimental import pallas as pl
from jax.experimental.pallas import tpu as pltpu

LN_EPS = 1e-5
CLIP_IMAGE_MEAN = (0.48145466, 0.4578275, 0.40821073)
CLIP_IMAGE_STD = (0.26862954, 0.26130258, 0.27577711)

_VMEM_LIMIT = 48 * 1024 * 1024  # conservative: fits v7x's 64 MiB physical VMEM


# ----------------------------- small helpers -----------------------------

def _round_up(x, m):
    return (x + m - 1) // m * m


def _choose_tile(dim, unit, tmax):
    """Pick a (unit-aligned) tile size and the padded extent it divides."""
    p = _round_up(dim, unit)
    t = min(tmax, p)
    p = _round_up(p, t)
    return t, p


def _pad2d(x, rows, cols):
    r, c = x.shape
    if r == rows and c == cols:
        return x
    return jnp.pad(x, ((0, rows - r), (0, cols - c)))


# ----------------------------- Pallas kernels -----------------------------

def _make_row_kernel(do_ln, activation, has_res):
    """Fused [LN] -> matmul(+bias) -> [QuickGELU] -> [+residual] kernel."""

    def kernel(*refs):
        idx = 0
        x_ref = refs[idx]; idx += 1
        if do_ln:
            g_ref, bln_ref = refs[idx], refs[idx + 1]; idx += 2
        w_ref, b_ref = refs[idx], refs[idx + 1]; idx += 2
        if has_res:
            res_ref = refs[idx]; idx += 1
        o_ref = refs[idx]

        x = x_ref[...]
        if do_ln:
            xf = x.astype(jnp.float32)
            mu = jnp.mean(xf, axis=-1, keepdims=True)
            var = jnp.mean((xf - mu) ** 2, axis=-1, keepdims=True)
            x = (xf - mu) * jax.lax.rsqrt(var + LN_EPS) * g_ref[...] + bln_ref[...]

        y = jnp.dot(x.astype(jnp.bfloat16), w_ref[...],
                    preferred_element_type=jnp.float32) + b_ref[...]
        if activation == "quick_gelu":
            y = y * jax.nn.sigmoid(1.702 * y)       # CLIP QuickGELU
        if has_res:
            y = y + res_ref[...].astype(jnp.float32)
        o_ref[...] = y.astype(o_ref.dtype)

    return kernel


def _mlp_kernel(x_ref, g_ref, bln_ref, w1_ref, b1_ref, w2_ref, b2_ref,
                res_ref, o_ref, xn_ref, acc_ref):
    """Fused LN -> fc1 -> QuickGELU -> fc2 -> +residual.

    Grid = (M tiles, MLP-hidden chunks).  The 4x-wide intermediate lives only
    in registers/VMEM; the f32 accumulator is a VMEM scratch."""
    j = pl.program_id(1)

    @pl.when(j == 0)
    def _():
        x = x_ref[...].astype(jnp.float32)
        mu = jnp.mean(x, axis=-1, keepdims=True)
        var = jnp.mean((x - mu) ** 2, axis=-1, keepdims=True)
        xn = (x - mu) * jax.lax.rsqrt(var + LN_EPS) * g_ref[...] + bln_ref[...]
        xn_ref[...] = xn.astype(jnp.bfloat16)
        acc_ref[...] = jnp.zeros_like(acc_ref)

    h = (jnp.dot(xn_ref[...], w1_ref[...], preferred_element_type=jnp.float32)
         + b1_ref[...])
    h = h * jax.nn.sigmoid(1.702 * h)               # QuickGELU
    acc_ref[...] += jnp.dot(h.astype(jnp.bfloat16), w2_ref[...],
                            preferred_element_type=jnp.float32)

    @pl.when(j == pl.num_programs(1) - 1)
    def _():
        o_ref[...] = (acc_ref[...] + b2_ref[...]
                      + res_ref[...].astype(jnp.float32)).astype(o_ref.dtype)


def _layernorm_kernel(x_ref, g_ref, b_ref, o_ref):
    x = x_ref[...].astype(jnp.float32)
    mu = jnp.mean(x, axis=-1, keepdims=True)
    var = jnp.mean((x - mu) ** 2, axis=-1, keepdims=True)
    o_ref[...] = ((x - mu) * jax.lax.rsqrt(var + LN_EPS)
                  * g_ref[...] + b_ref[...]).astype(o_ref.dtype)


def _attn_kernel(q_ref, k_ref, v_ref, o_ref, *, scale):
    # All heads of one batch element per grid step; refs are (H, S, dh) bf16.
    q = q_ref[...]
    k = k_ref[...]
    v = v_ref[...]
    # NT batched matmul (no explicit transpose of k).
    s = jnp.einsum("hqd,hkd->hqk", q, k,
                   preferred_element_type=jnp.float32) * scale
    s = s - jnp.max(s, axis=-1, keepdims=True)
    p = jnp.exp(s)
    p = p * pl.reciprocal(jnp.sum(p, axis=-1, keepdims=True), approx=True)
    o = jnp.einsum("hqk,hkd->hqd", p.astype(v.dtype), v,
                   preferred_element_type=jnp.float32)
    o_ref[...] = o.astype(o_ref.dtype)


# ----------------------------- kernel wrappers -----------------------------

def pallas_fused_dense(x, w, b, *, gamma=None, beta=None, residual=None,
                       activation=None, out_dtype=jnp.float32,
                       tm_max=256, tn_max=512):
    """y = [+residual] act( [LN(x)] @ w + b ), tiled over (M, N)."""
    M, K = x.shape
    N = w.shape[1]
    do_ln = gamma is not None
    has_res = residual is not None

    tm, Mp = _choose_tile(M, 8, tm_max)
    tn, Np = _choose_tile(N, 128, tn_max)

    xp = _pad2d(x, Mp, K)
    wp = _pad2d(w.astype(jnp.bfloat16), K, Np)
    bp = _pad2d(b.reshape(1, N).astype(jnp.float32), 1, Np)

    args = [xp]
    in_specs = [pl.BlockSpec((tm, K), lambda i, j: (i, 0))]
    if do_ln:
        args += [gamma.reshape(1, K).astype(jnp.float32),
                 beta.reshape(1, K).astype(jnp.float32)]
        in_specs += [pl.BlockSpec((1, K), lambda i, j: (0, 0)),
                     pl.BlockSpec((1, K), lambda i, j: (0, 0))]
    args += [wp, bp]
    in_specs += [pl.BlockSpec((K, tn), lambda i, j: (0, j)),
                 pl.BlockSpec((1, tn), lambda i, j: (0, j))]
    if has_res:
        args.append(_pad2d(residual.astype(jnp.float32), Mp, Np))
        in_specs.append(pl.BlockSpec((tm, tn), lambda i, j: (i, j)))

    out = pl.pallas_call(
        _make_row_kernel(do_ln, activation, has_res),
        out_shape=jax.ShapeDtypeStruct((Mp, Np), out_dtype),
        grid=(Mp // tm, Np // tn),
        in_specs=in_specs,
        out_specs=pl.BlockSpec((tm, tn), lambda i, j: (i, j)),
        compiler_params=pltpu.CompilerParams(
            dimension_semantics=("parallel", "parallel"),
            vmem_limit_bytes=_VMEM_LIMIT),
    )(*args)
    return out[:M, :N]


def pallas_fused_mlp(x, gamma, beta, w1, b1, w2, b2, residual, *,
                     tm_max=256, tmlp_max=512, out_dtype=jnp.float32):
    """residual + fc2(QuickGELU(fc1(LN(x)))) with the intermediate in VMEM."""
    M, D = x.shape
    Hm = w1.shape[1]
    tm, Mp = _choose_tile(M, 8, tm_max)
    tf, Hp = _choose_tile(Hm, 128, tmlp_max)

    xp = _pad2d(x, Mp, D)
    rp = _pad2d(residual.astype(jnp.float32), Mp, D)
    w1p = _pad2d(w1.astype(jnp.bfloat16), D, Hp)
    b1p = _pad2d(b1.reshape(1, Hm).astype(jnp.float32), 1, Hp)
    w2p = _pad2d(w2.astype(jnp.bfloat16), Hp, D)
    b2p = b2.reshape(1, D).astype(jnp.float32)

    out = pl.pallas_call(
        _mlp_kernel,
        out_shape=jax.ShapeDtypeStruct((Mp, D), out_dtype),
        grid=(Mp // tm, Hp // tf),
        in_specs=[
            pl.BlockSpec((tm, D), lambda i, j: (i, 0)),     # x
            pl.BlockSpec((1, D), lambda i, j: (0, 0)),      # ln gamma
            pl.BlockSpec((1, D), lambda i, j: (0, 0)),      # ln beta
            pl.BlockSpec((D, tf), lambda i, j: (0, j)),     # w1 chunk
            pl.BlockSpec((1, tf), lambda i, j: (0, j)),     # b1 chunk
            pl.BlockSpec((tf, D), lambda i, j: (j, 0)),     # w2 chunk
            pl.BlockSpec((1, D), lambda i, j: (0, 0)),      # b2
            pl.BlockSpec((tm, D), lambda i, j: (i, 0)),     # residual
        ],
        out_specs=pl.BlockSpec((tm, D), lambda i, j: (i, 0)),
        scratch_shapes=[pltpu.VMEM((tm, D), jnp.bfloat16),   # LN(x) cache
                        pltpu.VMEM((tm, D), jnp.float32)],   # accumulator
        compiler_params=pltpu.CompilerParams(
            dimension_semantics=("parallel", "arbitrary"),
            vmem_limit_bytes=_VMEM_LIMIT),
    )(xp, gamma.reshape(1, D).astype(jnp.float32),
      beta.reshape(1, D).astype(jnp.float32),
      w1p, b1p, w2p, b2p, rp)
    return out[:M]


def pallas_layernorm(x, gamma, beta, *, tm_max=512, out_dtype=jnp.float32):
    M, D = x.shape
    tm, Mp = _choose_tile(M, 8, tm_max)
    xp = _pad2d(x, Mp, D)
    out = pl.pallas_call(
        _layernorm_kernel,
        out_shape=jax.ShapeDtypeStruct((Mp, D), out_dtype),
        grid=(Mp // tm,),
        in_specs=[pl.BlockSpec((tm, D), lambda i: (i, 0)),
                  pl.BlockSpec((1, D), lambda i: (0, 0)),
                  pl.BlockSpec((1, D), lambda i: (0, 0))],
        out_specs=pl.BlockSpec((tm, D), lambda i: (i, 0)),
        compiler_params=pltpu.CompilerParams(
            dimension_semantics=("parallel",)),
    )(xp, gamma.reshape(1, D).astype(jnp.float32),
      beta.reshape(1, D).astype(jnp.float32))
    return out[:M]


def pallas_attention(q, k, v, scale):
    # q, k, v: (B, H, S, dh) bf16 -> (B, H, S, dh) bf16
    B, H, S, dh = q.shape
    kern = functools.partial(_attn_kernel, scale=scale)
    spec = pl.BlockSpec((None, H, S, dh), lambda b: (b, 0, 0, 0))
    return pl.pallas_call(
        kern,
        out_shape=jax.ShapeDtypeStruct((B, H, S, dh), jnp.bfloat16),
        grid=(B,),
        in_specs=[spec, spec, spec],
        out_specs=pl.BlockSpec((None, H, S, dh), lambda b: (b, 0, 0, 0)),
        compiler_params=pltpu.CompilerParams(
            dimension_semantics=("parallel",),
            vmem_limit_bytes=_VMEM_LIMIT),
    )(q, k, v)


# ----------------------------- model definition -----------------------------

def init_params(key, *, channels, image_size, patch_size, hidden, heads,
                mlp_dim, num_layers):
    num_patches = (image_size // patch_size) ** 2
    seq = num_patches + 1
    ks = jax.random.split(key, 8 + 12 * num_layers)
    ki = iter(range(len(ks)))

    def nrm(shape, s=0.02):
        return (s * jax.random.normal(ks[next(ki)], shape)).astype(jnp.float32)

    params = {
        "patch_w": nrm((hidden, channels, patch_size, patch_size)),  # Conv2d, no bias
        "class_emb": nrm((hidden,)),
        "pos_emb": nrm((seq, hidden)),
        "pre_ln_g": jnp.ones((hidden,), jnp.float32),
        "pre_ln_b": jnp.zeros((hidden,), jnp.float32),
        "post_ln_g": jnp.ones((hidden,), jnp.float32),
        "post_ln_b": jnp.zeros((hidden,), jnp.float32),
        "layers": [],
    }
    for _ in range(num_layers):
        params["layers"].append({
            "ln1_g": jnp.ones((hidden,), jnp.float32),
            "ln1_b": jnp.zeros((hidden,), jnp.float32),
            "wq": nrm((hidden, hidden)), "bq": nrm((hidden,)),
            "wk": nrm((hidden, hidden)), "bk": nrm((hidden,)),
            "wv": nrm((hidden, hidden)), "bv": nrm((hidden,)),
            "wo": nrm((hidden, hidden)), "bo": nrm((hidden,)),
            "ln2_g": jnp.ones((hidden,), jnp.float32),
            "ln2_b": jnp.zeros((hidden,), jnp.float32),
            "w1": nrm((hidden, mlp_dim)), "b1": nrm((mlp_dim,)),
            "w2": nrm((mlp_dim, hidden)), "b2": nrm((hidden,)),
        })
    return params


def image_encoder_forward(image, params, *, patch_size, num_heads):
    """image: (B, C, H, W) float32 in [0,1]  ->  pooler_output: (B, D)."""
    # TODO(synk): CLIPProcessor's bicubic resize to 224x224 is omitted; the
    # synthetic input is already at the model's (small) image size.
    x = image.astype(jnp.float32)
    B, C, H, W = x.shape
    P = patch_size
    D = params["class_emb"].shape[0]
    nh, nw = H // P, W // P
    num_patches = nh * nw

    # --- Patch embedding == Conv2d(C, D, k=P, s=P, bias=False) as a matmul,
    # with CLIPProcessor's per-channel (mean, std) normalization folded into
    # the weights (exact affine absorption): w' = w/std, b' = -sum w*mean/std.
    mean = jnp.asarray(CLIP_IMAGE_MEAN[:C], jnp.float32)
    std = jnp.asarray(CLIP_IMAGE_STD[:C], jnp.float32)
    w_conv = params["patch_w"]                              # (D, C, P, P)
    w_norm = w_conv / std[None, :, None, None]
    b_norm = -jnp.einsum("dcij,c->d", w_conv, mean / std)

    patches = (x.reshape(B, C, nh, P, nw, P)
                .transpose(0, 2, 4, 1, 3, 5)                # (B, nh, nw, C, P, P)
                .reshape(B * num_patches, C * P * P))
    K = C * P * P
    Kp = _round_up(K, 128)                                  # clean MXU K passes
    patches = jnp.pad(patches, ((0, 0), (0, Kp - K)))
    w_patch = jnp.pad(w_norm.reshape(D, K).T, ((0, Kp - K), (0, 0)))  # (Kp, D)

    patch_emb = pallas_fused_dense(patches, w_patch, b_norm)
    patch_emb = patch_emb.reshape(B, num_patches, D)

    cls = jnp.broadcast_to(params["class_emb"].reshape(1, 1, D), (B, 1, D))
    h = jnp.concatenate([cls, patch_emb], axis=1) + params["pos_emb"][None]
    S = h.shape[1]
    M = B * S

    # pre_layrnorm
    h = pallas_layernorm(h.reshape(M, D),
                         params["pre_ln_g"], params["pre_ln_b"]).reshape(B, S, D)

    dh = D // num_heads
    scale = dh ** -0.5

    for layer in params["layers"]:
        # --- self-attention block: fused LN + QKV (single (D, 3D) matmul)
        h2d = h.reshape(M, D)
        w_qkv = jnp.concatenate([layer["wq"], layer["wk"], layer["wv"]], axis=1)
        b_qkv = jnp.concatenate([layer["bq"], layer["bk"], layer["bv"]])
        qkv = pallas_fused_dense(h2d, w_qkv, b_qkv,
                                 gamma=layer["ln1_g"], beta=layer["ln1_b"],
                                 out_dtype=jnp.bfloat16)
        q, k, v = jnp.split(qkv, 3, axis=1)

        def split_heads(t):
            return t.reshape(B, S, num_heads, dh).transpose(0, 2, 1, 3)

        attn = pallas_attention(split_heads(q), split_heads(k), split_heads(v),
                                scale)
        attn = attn.transpose(0, 2, 1, 3).reshape(M, D)

        # out-projection with the residual add fused into the matmul epilogue
        h = pallas_fused_dense(attn, layer["wo"], layer["bo"],
                               residual=h2d).reshape(B, S, D)

        # --- MLP block: LN -> fc1 -> QuickGELU -> fc2 -> +residual, fused;
        # the 4x-wide intermediate never leaves VMEM.
        h2d = h.reshape(M, D)
        h = pallas_fused_mlp(h2d, layer["ln2_g"], layer["ln2_b"],
                             layer["w1"], layer["b1"],
                             layer["w2"], layer["b2"],
                             h2d).reshape(B, S, D)

    # pooler_output = post_layernorm(last_hidden_state[:, 0, :])
    cls_tok = h[:, 0, :]
    return pallas_layernorm(cls_tok, params["post_ln_g"], params["post_ln_b"])


# ----------------------------------- main -----------------------------------

if __name__ == "__main__":
    key = jax.random.PRNGKey(0)
    k_img, k_par = jax.random.split(key)

    # Small synthetic CLIP-vision config.
    B, C, IMG, PATCH = 2, 3, 16, 8
    HIDDEN, HEADS, MLP, LAYERS = 32, 4, 128, 2

    image = jax.random.uniform(k_img, (B, C, IMG, IMG), jnp.float32)  # pixels in [0,1]
    params = init_params(
        k_par, channels=C, image_size=IMG, patch_size=PATCH,
        hidden=HIDDEN, heads=HEADS, mlp_dim=MLP, num_layers=LAYERS,
    )

    fwd = jax.jit(functools.partial(image_encoder_forward,
                                    patch_size=PATCH, num_heads=HEADS))
    pooled = fwd(image, params)
    pooled = jax.block_until_ready(pooled)
    assert pooled.shape == (B, HIDDEN) and pooled.dtype == jnp.float32
    assert bool(jnp.all(jnp.isfinite(pooled)))
    print("KERNEL_OK")
</pallas_src>

<mosaic_0001>
module attributes {stable_mosaic.version = 11 : i64} {
  func.func @kernel(%arg0: i32, %arg1: i32, %arg2: memref<8x256xf32, #tpu.memory_space<vmem>>, %arg3: memref<256x128xbf16, #tpu.memory_space<vmem>>, %arg4: memref<1x128xf32, #tpu.memory_space<vmem>>, %arg5: memref<8x128xf32, #tpu.memory_space<vmem>>) attributes {dimension_semantics = [#tpu.dimension_semantics<parallel>, #tpu.dimension_semantics<parallel>], iteration_bounds = array<i64: 1, 1>, scalar_prefetch = 0 : i64, scratch_operands = 0 : i64, tpu.core_type = #tpu.core_type<tc>, window_params = [{transform_indices = @transform_0, window_bounds = array<i64: 8, 256>}, {transform_indices = @transform_1, window_bounds = array<i64: 256, 128>}, {transform_indices = @transform_2, window_bounds = array<i64: 1, 128>}, {transform_indices = @transform_3, window_bounds = array<i64: 8, 128>}]} {
    %c0 = arith.constant 0 : index
    %c0_0 = arith.constant 0 : index
    %0 = vector.load %arg2[%c0, %c0_0] : memref<8x256xf32, #tpu.memory_space<vmem>>, vector<8x256xf32>
    %1 = arith.truncf %0 : vector<8x256xf32> to vector<8x256xbf16>
    %c0_1 = arith.constant 0 : index
    %c0_2 = arith.constant 0 : index
    %2 = vector.load %arg3[%c0_1, %c0_2] : memref<256x128xbf16, #tpu.memory_space<vmem>>, vector<256x128xbf16>
    %cst = arith.constant dense<0.000000e+00> : vector<8x128xf32>
    %3 = tpu.matmul %1, %2, %cst {dimension_numbers = #tpu.dot_dimension_numbers<[1], [0], [0], [1], [0, 0, 1, 1], [], []>} : vector<8x256xbf16>, vector<256x128xbf16>, vector<8x128xf32> -> vector<8x128xf32>
    %c0_3 = arith.constant 0 : index
    %c0_4 = arith.constant 0 : index
    %4 = vector.load %arg4[%c0_3, %c0_4] : memref<1x128xf32, #tpu.memory_space<vmem>>, vector<1x128xf32>
    %5 = vector.broadcast %4 : vector<1x128xf32> to vector<8x128xf32>
    %6 = arith.addf %3, %5 : vector<8x128xf32>
    %c0_5 = arith.constant 0 : index
    %c0_6 = arith.constant 0 : index
    %7 = vector.load %arg5[%c0_5, %c0_6] : memref<8x128xf32, #tpu.memory_space<vmem>>, vector<8x128xf32>
    tpu.vector_store %arg5[%c0_5, %c0_6], %6 {strides = array<i32>} : memref<8x128xf32, #tpu.memory_space<vmem>>, vector<8x128xf32>,
    return
  }
  func.func @transform_0(%arg0: i32, %arg1: i32) -> (i32, i32) {
    %c0_i32 = arith.constant 0 : i32
    %c0_i32_0 = arith.constant 0 : i32
    return %arg0, %c0_i32 : i32, i32
  }
  func.func @transform_1(%arg0: i32, %arg1: i32) -> (i32, i32) {
    %c0_i32 = arith.constant 0 : i32
    %c0_i32_0 = arith.constant 0 : i32
    return %c0_i32, %arg1 : i32, i32
  }
  func.func @transform_2(%arg0: i32, %arg1: i32) -> (i32, i32) {
    %c0_i32 = arith.constant 0 : i32
    %c0_i32_0 = arith.constant 0 : i32
    return %c0_i32, %arg1 : i32, i32
  }
  func.func @transform_3(%arg0: i32, %arg1: i32) -> (i32, i32) {
    %c0_i32 = arith.constant 0 : i32
    return %arg0, %arg1 : i32, i32
  }
}

module attributes {stable_mosaic.version = 11 : i64} {
  func.func @_layernorm_kernel(%arg0: i32, %arg1: memref<16x32xf32, #tpu.memory_space<vmem>>, %arg2: memref<1x32xf32, #tpu.memory_space<vmem>>, %arg3: memref<1x32xf32, #tpu.memory_space<vmem>>, %arg4: memref<16x32xf32, #tpu.memory_space<vmem>>) attributes {dimension_semantics = [#tpu.dimension_semantics<parallel>], iteration_bounds = array<i64: 1>, scalar_prefetch = 0 : i64, scratch_operands = 0 : i64, tpu.core_type = #tpu.core_type<tc>, window_params = [{transform_indices = @transform_0, window_bounds = array<i64: 16, 32>}, {pipeline_mode = #tpu.pipeline_mode<synchronous>, transform_indices = @transform_1, window_bounds = array<i64: 1, 32>}, {pipeline_mode = #tpu.pipeline_mode<synchronous>, transform_indices = @transform_2, window_bounds = array<i64: 1, 32>}, {transform_indices = @transform_3, window_bounds = array<i64: 16, 32>}]} {
    %c0 = arith.constant 0 : index
    %c0_0 = arith.constant 0 : index
    %0 = vector.load %arg1[%c0, %c0_0] : memref<16x32xf32, #tpu.memory_space<vmem>>, vector<16x32xf32>
    %cst = arith.constant dense<0.000000e+00> : vector<16xf32>
    %1 = vector.multi_reduction <add>, %0, %cst [1] : vector<16x32xf32> to vector<16xf32>
    %2 = vector.shape_cast %1 : vector<16xf32> to vector<16x1xf32>
    %cst_1 = arith.constant 3.200000e+01 : f32
    %3 = vector.broadcast %cst_1 : f32 to vector<16x1xf32>
    %4 = arith.divf %2, %3 : vector<16x1xf32>
    %5 = vector.broadcast %4 : vector<16x1xf32> to vector<16x32xf32>
    %6 = arith.subf %0, %5 : vector<16x32xf32>
    %7 = arith.mulf %6, %6 : vector<16x32xf32>
    %cst_2 = arith.constant dense<0.000000e+00> : vector<16xf32>
    %8 = vector.multi_reduction <add>, %7, %cst_2 [1] : vector<16x32xf32> to vector<16xf32>
    %9 = vector.shape_cast %8 : vector<16xf32> to vector<16x1xf32>
    %cst_3 = arith.constant 3.200000e+01 : f32
    %10 = vector.broadcast %cst_3 : f32 to vector<16x1xf32>
    %11 = arith.divf %9, %10 : vector<16x1xf32>
    %12 = vector.broadcast %4 : vector<16x1xf32> to vector<16x32xf32>
    %13 = arith.subf %0, %12 : vector<16x32xf32>
    %cst_4 = arith.constant 9.99999974E-6 : f32
    %14 = vector.broadcast %cst_4 : f32 to vector<16x1xf32>
    %15 = arith.addf %11, %14 : vector<16x1xf32>
    %16 = math.rsqrt %15 : vector<16x1xf32>
    %17 = vector.broadcast %16 : vector<16x1xf32> to vector<16x32xf32>
    %18 = arith.mulf %13, %17 : vector<16x32xf32>
    %c0_5 = arith.constant 0 : index
    %c0_6 = arith.constant 0 : index
    %19 = vector.load %arg2[%c0_5, %c0_6] : memref<1x32xf32, #tpu.memory_space<vmem>>, vector<1x32xf32>
    %20 = vector.broadcast %19 : vector<1x32xf32> to vector<16x32xf32>
    %21 = arith.mulf %18, %20 : vector<16x32xf32>
    %c0_7 = arith.constant 0 : index
    %c0_8 = arith.constant 0 : index
    %22 = vector.load %arg3[%c0_7, %c0_8] : memref<1x32xf32, #tpu.memory_space<vmem>>, vector<1x32xf32>
    %23 = vector.broadcast %22 : vector<1x32xf32> to vector<16x32xf32>
    %24 = arith.addf %21, %23 : vector<16x32xf32>
    %c0_9 = arith.constant 0 : index
    %c0_10 = arith.constant 0 : index
    %25 = vector.load %arg4[%c0_9, %c0_10] : memref<16x32xf32, #tpu.memory_space<vmem>>, vector<16x32xf32>
    tpu.vector_store %arg4[%c0_9, %c0_10], %24 {strides = array<i32>} : memref<16x32xf32, #tpu.memory_space<vmem>>, vector<16x32xf32>,
    return
  }
  func.func @transform_0(%arg0: i32) -> (i32, i32) {
    %c0_i32 = arith.constant 0 : i32
    %c0_i32_0 = arith.constant 0 : i32
    return %arg0, %c0_i32 : i32, i32
  }
  func.func @transform_1(%arg0: i32) -> (i32, i32) {
    %c0_i32 = arith.constant 0 : i32
    %c0_i32_0 = arith.constant 0 : i32
    %c0_i32_1 = arith.constant 0 : i32
    return %c0_i32, %c0_i32_0 : i32, i32
  }
  func.func @transform_2(%arg0: i32) -> (i32, i32) {
    %c0_i32 = arith.constant 0 : i32
    %c0_i32_0 = arith.constant 0 : i32
    %c0_i32_1 = arith.constant 0 : i32
    return %c0_i32, %c0_i32_0 : i32, i32
  }
  func.func @transform_3(%arg0: i32) -> (i32, i32) {
    %c0_i32 = arith.constant 0 : i32
    %c0_i32_0 = arith.constant 0 : i32
    return %arg0, %c0_i32 : i32, i32
  }
}

module attributes {stable_mosaic.version = 11 : i64} {
  func.func @_attn_kernel(%arg0: i32, %arg1: memref<1x4x5x8xbf16, #tpu.memory_space<vmem>>, %arg2: memref<1x4x5x8xbf16, #tpu.memory_space<vmem>>, %arg3: memref<1x4x5x8xbf16, #tpu.memory_space<vmem>>, %arg4: memref<1x4x5x8xbf16, #tpu.memory_space<vmem>>) attributes {dimension_semantics = [#tpu.dimension_semantics<parallel>], iteration_bounds = array<i64: 2>, scalar_prefetch = 0 : i64, scratch_operands = 0 : i64, tpu.core_type = #tpu.core_type<tc>, window_params = [{transform_indices = @transform_0, window_bounds = array<i64: 1, 4, 5, 8>}, {transform_indices = @transform_1, window_bounds = array<i64: 1, 4, 5, 8>}, {transform_indices = @transform_2, window_bounds = array<i64: 1, 4, 5, 8>}, {transform_indices = @transform_3, window_bounds = array<i64: 1, 4, 5, 8>}]} {
    %c0 = arith.constant 0 : index
    %c0_0 = arith.constant 0 : index
    %c0_1 = arith.constant 0 : index
    %c0_2 = arith.constant 0 : index
    %0 = vector.load %arg1[%c0, %c0_0, %c0_1, %c0_2] : memref<1x4x5x8xbf16, #tpu.memory_space<vmem>>, vector<1x4x5x8xbf16>
    %1 = vector.shape_cast %0 : vector<1x4x5x8xbf16> to vector<4x5x8xbf16>
    %c0_3 = arith.constant 0 : index
    %c0_4 = arith.constant 0 : index
    %c0_5 = arith.constant 0 : index
    %c0_6 = arith.constant 0 : index
    %2 = vector.load %arg2[%c0_3, %c0_4, %c0_5, %c0_6] : memref<1x4x5x8xbf16, #tpu.memory_space<vmem>>, vector<1x4x5x8xbf16>
    %3 = vector.shape_cast %2 : vector<1x4x5x8xbf16> to vector<4x5x8xbf16>
    %c0_7 = arith.constant 0 : index
    %c0_8 = arith.constant 0 : index
    %c0_9 = arith.constant 0 : index
    %c0_10 = arith.constant 0 : index
    %4 = vector.load %arg3[%c0_7, %c0_8, %c0_9, %c0_10] : memref<1x4x5x8xbf16, #tpu.memory_space<vmem>>, vector<1x4x5x8xbf16>
    %5 = vector.shape_cast %4 : vector<1x4x5x8xbf16> to vector<4x5x8xbf16>
    "tpu.trace_start"() <{level = 10 : i32, message = "hqd,hkd->hqk"}> : () -> ()
    %cst = arith.constant dense<0.000000e+00> : vector<4x5x5xf32>
    %6 = tpu.matmul %1, %3, %cst {dimension_numbers = #tpu.dot_dimension_numbers<[2], [2], [1], [1], [0, 0, 0, 1, 1, 1], [0], [0]>} : vector<4x5x8xbf16>, vector<4x5x8xbf16>, vector<4x5x5xf32> -> vector<4x5x5xf32>
    "tpu.trace_stop"() : () -> ()
    %cst_11 = arith.constant 0.353553385 : f32
    %7 = vector.broadcast %cst_11 : f32 to vector<4x5x5xf32>
    %8 = arith.mulf %6, %7 : vector<4x5x5xf32>
    %cst_12 = arith.constant dense<0xFF800000> : vector<4x5xf32>
    %9 = vector.multi_reduction <maximumf>, %8, %cst_12 [2] : vector<4x5x5xf32> to vector<4x5xf32>
    %10 = vector.shape_cast %9 : vector<4x5xf32> to vector<4x5x1xf32>
    %11 = vector.broadcast %10 : vector<4x5x1xf32> to vector<4x5x5xf32>
    %12 = arith.subf %8, %11 : vector<4x5x5xf32>
    %13 = math.exp %12 : vector<4x5x5xf32>
    %cst_13 = arith.constant dense<0.000000e+00> : vector<4x5xf32>
    %14 = vector.multi_reduction <add>, %13, %cst_13 [2] : vector<4x5x5xf32> to vector<4x5xf32>
    %15 = vector.shape_cast %14 : vector<4x5xf32> to vector<4x5x1xf32>
    %16 = tpu.reciprocal %15 {approx = true} : vector<4x5x1xf32> -> vector<4x5x1xf32>
    %17 = vector.broadcast %16 : vector<4x5x1xf32> to vector<4x5x5xf32>
    %18 = arith.mulf %13, %17 : vector<4x5x5xf32>
    %19 = arith.truncf %18 : vector<4x5x5xf32> to vector<4x5x5xbf16>
    "tpu.trace_start"() <{level = 10 : i32, message = "hqk,hkd->hqd"}> : () -> ()
    %cst_14 = arith.constant dense<0.000000e+00> : vector<4x5x8xf32>
    %20 = tpu.matmul %19, %5, %cst_14 {dimension_numbers = #tpu.dot_dimension_numbers<[2], [1], [1], [2], [0, 0, 0, 1, 1, 2], [0], [0]>} : vector<4x5x5xbf16>, vector<4x5x8xbf16>, vector<4x5x8xf32> -> vector<4x5x8xf32>
    "tpu.trace_stop"() : () -> ()
    %21 = arith.truncf %20 : vector<4x5x8xf32> to vector<4x5x8xbf16>
    %c0_15 = arith.constant 0 : index
    %c0_16 = arith.constant 0 : index
    %c0_17 = arith.constant 0 : index
    %c0_18 = arith.constant 0 : index
    %22 = vector.load %arg4[%c0_15, %c0_16, %c0_17, %c0_18] : memref<1x4x5x8xbf16, #tpu.memory_space<vmem>>, vector<1x4x5x8xbf16>
    %23 = vector.shape_cast %22 : vector<1x4x5x8xbf16> to vector<4x5x8xbf16>
    %24 = vector.shape_cast %21 : vector<4x5x8xbf16> to vector<1x4x5x8xbf16>
    tpu.vector_store %arg4[%c0_15, %c0_16, %c0_17, %c0_18], %24 {strides = array<i32>} : memref<1x4x5x8xbf16, #tpu.memory_space<vmem>>, vector<1x4x5x8xbf16>,
    return
  }
  func.func @transform_0(%arg0: i32) -> (i32, i32, i32, i32) {
    %c0_i32 = arith.constant 0 : i32
    %c0_i32_0 = arith.constant 0 : i32
    %c0_i32_1 = arith.constant 0 : i32
    %c0_i32_2 = arith.constant 0 : i32
    return %arg0, %c0_i32, %c0_i32_0, %c0_i32_1 : i32, i32, i32, i32
  }
  func.func @transform_1(%arg0: i32) -> (i32, i32, i32, i32) {
    %c0_i32 = arith.constant 0 : i32
    %c0_i32_0 = arith.constant 0 : i32
    %c0_i32_1 = arith.constant 0 : i32
    %c0_i32_2 = arith.constant 0 : i32
    return %arg0, %c0_i32, %c0_i32_0, %c0_i32_1 : i32, i32, i32, i32
  }
  func.func @transform_2(%arg0: i32) -> (i32, i32, i32, i32) {
    %c0_i32 = arith.constant 0 : i32
    %c0_i32_0 = arith.constant 0 : i32
    %c0_i32_1 = arith.constant 0 : i32
    %c0_i32_2 = arith.constant 0 : i32
    return %arg0, %c0_i32, %c0_i32_0, %c0_i32_1 : i32, i32, i32, i32
  }
  func.func @transform_3(%arg0: i32) -> (i32, i32, i32, i32) {
    %c0_i32 = arith.constant 0 : i32
    %c0_i32_0 = arith.constant 0 : i32
    %c0_i32_1 = arith.constant 0 : i32
    %c0_i32_2 = arith.constant 0 : i32
    return %arg0, %c0_i32, %c0_i32_0, %c0_i32_1 : i32, i32, i32, i32
  }
}

module attributes {stable_mosaic.version = 11 : i64} {
  func.func @kernel(%arg0: i32, %arg1: i32, %arg2: memref<16x32xf32, #tpu.memory_space<vmem>>, %arg3: memref<1x32xf32, #tpu.memory_space<vmem>>, %arg4: memref<1x32xf32, #tpu.memory_space<vmem>>, %arg5: memref<32x128xbf16, #tpu.memory_space<vmem>>, %arg6: memref<1x128xf32, #tpu.memory_space<vmem>>, %arg7: memref<16x128xbf16, #tpu.memory_space<vmem>>) attributes {dimension_semantics = [#tpu.dimension_semantics<parallel>, #tpu.dimension_semantics<parallel>], iteration_bounds = array<i64: 1, 1>, scalar_prefetch = 0 : i64, scratch_operands = 0 : i64, tpu.core_type = #tpu.core_type<tc>, window_params = [{transform_indices = @transform_0, window_bounds = array<i64: 16, 32>}, {pipeline_mode = #tpu.pipeline_mode<synchronous>, transform_indices = @transform_1, window_bounds = array<i64: 1, 32>}, {pipeline_mode = #tpu.pipeline_mode<synchronous>, transform_indices = @transform_2, window_bounds = array<i64: 1, 32>}, {transform_indices = @transform_3, window_bounds = array<i64: 32, 128>}, {transform_indices = @transform_4, window_bounds = array<i64: 1, 128>}, {transform_indices = @transform_5, window_bounds = array<i64: 16, 128>}]} {
    %c0 = arith.constant 0 : index
    %c0_0 = arith.constant 0 : index
    %0 = vector.load %arg2[%c0, %c0_0] : memref<16x32xf32, #tpu.memory_space<vmem>>, vector<16x32xf32>
    %cst = arith.constant dense<0.000000e+00> : vector<16xf32>
    %1 = vector.multi_reduction <add>, %0, %cst [1] : vector<16x32xf32> to vector<16xf32>
    %2 = vector.shape_cast %1 : vector<16xf32> to vector<16x1xf32>
    %cst_1 = arith.constant 3.200000e+01 : f32
    %3 = vector.broadcast %cst_1 : f32 to vector<16x1xf32>
    %4 = arith.divf %2, %3 : vector<16x1xf32>
    %5 = vector.broadcast %4 : vector<16x1xf32> to vector<16x32xf32>
    %6 = arith.subf %0, %5 : vector<16x32xf32>
    %7 = arith.mulf %6, %6 : vector<16x32xf32>
    %cst_2 = arith.constant dense<0.000000e+00> : vector<16xf32>
    %8 = vector.multi_reduction <add>, %7, %cst_2 [1] : vector<16x32xf32> to vector<16xf32>
    %9 = vector.shape_cast %8 : vector<16xf32> to vector<16x1xf32>
    %cst_3 = arith.constant 3.200000e+01 : f32
    %10 = vector.broadcast %cst_3 : f32 to vector<16x1xf32>
    %11 = arith.divf %9, %10 : vector<16x1xf32>
    %12 = vector.broadcast %4 : vector<16x1xf32> to vector<16x32xf32>
    %13 = arith.subf %0, %12 : vector<16x32xf32>
    %cst_4 = arith.constant 9.99999974E-6 : f32
    %14 = vector.broadcast %cst_4 : f32 to vector<16x1xf32>
    %15 = arith.addf %11, %14 : vector<16x1xf32>
    %16 = math.rsqrt %15 : vector<16x1xf32>
    %17 = vector.broadcast %16 : vector<16x1xf32> to vector<16x32xf32>
    %18 = arith.mulf %13, %17 : vector<16x32xf32>
    %c0_5 = arith.constant 0 : index
    %c0_6 = arith.constant 0 : index
    %19 = vector.load %arg3[%c0_5, %c0_6] : memref<1x32xf32, #tpu.memory_space<vmem>>, vector<1x32xf32>
    %20 = vector.broadcast %19 : vector<1x32xf32> to vector<16x32xf32>
    %21 = arith.mulf %18, %20 : vector<16x32xf32>
    %c0_7 = arith.constant 0 : index
    %c0_8 = arith.constant 0 : index
    %22 = vector.load %arg4[%c0_7, %c0_8] : memref<1x32xf32, #tpu.memory_space<vmem>>, vector<1x32xf32>
    %23 = vector.broadcast %22 : vector<1x32xf32> to vector<16x32xf32>
    %24 = arith.addf %21, %23 : vector<16x32xf32>
    %25 = arith.truncf %24 : vector<16x32xf32> to vector<16x32xbf16>
    %c0_9 = arith.constant 0 : index
    %c0_10 = arith.constant 0 : index
    %26 = vector.load %arg5[%c0_9, %c0_10] : memref<32x128xbf16, #tpu.memory_space<vmem>>, vector<32x128xbf16>
    %cst_11 = arith.constant dense<0.000000e+00> : vector<16x128xf32>
    %27 = tpu.matmul %25, %26, %cst_11 {dimension_numbers = #tpu.dot_dimension_numbers<[1], [0], [0], [1], [0, 0, 1, 1], [], []>} : vector<16x32xbf16>, vector<32x128xbf16>, vector<16x128xf32> -> vector<16x128xf32>
    %c0_12 = arith.constant 0 : index
    %c0_13 = arith.constant 0 : index
    %28 = vector.load %arg6[%c0_12, %c0_13] : memref<1x128xf32, #tpu.memory_space<vmem>>, vector<1x128xf32>
    %29 = vector.broadcast %28 : vector<1x128xf32> to vector<16x128xf32>
    %30 = arith.addf %27, %29 : vector<16x128xf32>
    %31 = arith.truncf %30 : vector<16x128xf32> to vector<16x128xbf16>
    %c0_14 = arith.constant 0 : index
    %c0_15 = arith.constant 0 : index
    %32 = vector.load %arg7[%c0_14, %c0_15] : memref<16x128xbf16, #tpu.memory_space<vmem>>, vector<16x128xbf16>
    tpu.vector_store %arg7[%c0_14, %c0_15], %31 {strides = array<i32>} : memref<16x128xbf16, #tpu.memory_space<vmem>>, vector<16x128xbf16>,
    return
  }
  func.func @transform_0(%arg0: i32, %arg1: i32) -> (i32, i32) {
    %c0_i32 = arith.constant 0 : i32
    %c0_i32_0 = arith.constant 0 : i32
    return %arg0, %c0_i32 : i32, i32
  }
  func.func @transform_1(%arg0: i32, %arg1: i32) -> (i32, i32) {
    %c0_i32 = arith.constant 0 : i32
    %c0_i32_0 = arith.constant 0 : i32
    %c0_i32_1 = arith.constant 0 : i32
    return %c0_i32, %c0_i32_0 : i32, i32
  }
  func.func @transform_2(%arg0: i32, %arg1: i32) -> (i32, i32) {
    %c0_i32 = arith.constant 0 : i32
    %c0_i32_0 = arith.constant 0 : i32
    %c0_i32_1 = arith.constant 0 : i32
    return %c0_i32, %c0_i32_0 : i32, i32
  }
  func.func @transform_3(%arg0: i32, %arg1: i32) -> (i32, i32) {
    %c0_i32 = arith.constant 0 : i32
    %c0_i32_0 = arith.constant 0 : i32
    return %c0_i32, %arg1 : i32, i32
  }
  func.func @transform_4(%arg0: i32, %arg1: i32) -> (i32, i32) {
    %c0_i32 = arith.constant 0 : i32
    %c0_i32_0 = arith.constant 0 : i32
    return %c0_i32, %arg1 : i32, i32
  }
  func.func @transform_5(%arg0: i32, %arg1: i32) -> (i32, i32) {
    %c0_i32 = arith.constant 0 : i32
    return %arg0, %arg1 : i32, i32
  }
}

module attributes {stable_mosaic.version = 11 : i64} {
  func.func @_mlp_kernel(%arg0: i32, %arg1: i32, %arg2: memref<16x32xf32, #tpu.memory_space<vmem>>, %arg3: memref<1x32xf32, #tpu.memory_space<vmem>>, %arg4: memref<1x32xf32, #tpu.memory_space<vmem>>, %arg5: memref<32x128xbf16, #tpu.memory_space<vmem>>, %arg6: memref<1x128xf32, #tpu.memory_space<vmem>>, %arg7: memref<128x32xbf16, #tpu.memory_space<vmem>>, %arg8: memref<1x32xf32, #tpu.memory_space<vmem>>, %arg9: memref<16x32xf32, #tpu.memory_space<vmem>>, %arg10: memref<16x32xf32, #tpu.memory_space<vmem>>, %arg11: memref<16x32xbf16, #tpu.memory_space<vmem>>, %arg12: memref<16x32xf32, #tpu.memory_space<vmem>>) attributes {dimension_semantics = [#tpu.dimension_semantics<parallel>, #tpu.dimension_semantics<arbitrary>], iteration_bounds = array<i64: 1, 1>, scalar_prefetch = 0 : i64, scratch_operands = 2 : i64, tpu.core_type = #tpu.core_type<tc>, window_params = [{transform_indices = @transform_0, window_bounds = array<i64: 16, 32>}, {pipeline_mode = #tpu.pipeline_mode<synchronous>, transform_indices = @transform_1, window_bounds = array<i64: 1, 32>}, {pipeline_mode = #tpu.pipeline_mode<synchronous>, transform_indices = @transform_2, window_bounds = array<i64: 1, 32>}, {transform_indices = @transform_3, window_bounds = array<i64: 32, 128>}, {transform_indices = @transform_4, window_bounds = array<i64: 1, 128>}, {transform_indices = @transform_5, window_bounds = array<i64: 128, 32>}, {pipeline_mode = #tpu.pipeline_mode<synchronous>, transform_indices = @transform_6, window_bounds = array<i64: 1, 32>}, {transform_indices = @transform_7, window_bounds = array<i64: 16, 32>}, {transform_indices = @transform_8, window_bounds = array<i64: 16, 32>}]} {
    %c0_i32 = arith.constant 0 : i32
    %0 = arith.cmpi eq, %arg1, %c0_i32 : i32
    %1 = arith.extui %0 : i1 to i32
    %c0_i32_0 = arith.constant 0 : i32
    %2 = arith.cmpi ne, %1, %c0_i32_0 : i32
    scf.if %2 {
      %c0_17 = arith.constant 0 : index
      %c0_18 = arith.constant 0 : index
      %26 = vector.load %arg2[%c0_17, %c0_18] : memref<16x32xf32, #tpu.memory_space<vmem>>, vector<16x32xf32>
      %cst_19 = arith.constant dense<0.000000e+00> : vector<16xf32>
      %27 = vector.multi_reduction <add>, %26, %cst_19 [1] : vector<16x32xf32> to vector<16xf32>
      %28 = vector.shape_cast %27 : vector<16xf32> to vector<16x1xf32>
      %cst_20 = arith.constant 3.200000e+01 : f32
      %29 = vector.broadcast %cst_20 : f32 to vector<16x1xf32>
      %30 = arith.divf %28, %29 : vector<16x1xf32>
      %31 = vector.broadcast %30 : vector<16x1xf32> to vector<16x32xf32>
      %32 = arith.subf %26, %31 : vector<16x32xf32>
      %33 = arith.mulf %32, %32 : vector<16x32xf32>
      %cst_21 = arith.constant dense<0.000000e+00> : vector<16xf32>
      %34 = vector.multi_reduction <add>, %33, %cst_21 [1] : vector<16x32xf32> to vector<16xf32>
      %35 = vector.shape_cast %34 : vector<16xf32> to vector<16x1xf32>
      %cst_22 = arith.constant 3.200000e+01 : f32
      %36 = vector.broadcast %cst_22 : f32 to vector<16x1xf32>
      %37 = arith.divf %35, %36 : vector<16x1xf32>
      %38 = vector.broadcast %30 : vector<16x1xf32> to vector<16x32xf32>
      %39 = arith.subf %26, %38 : vector<16x32xf32>
      %cst_23 = arith.constant 9.99999974E-6 : f32
      %40 = vector.broadcast %cst_23 : f32 to vector<16x1xf32>
      %41 = arith.addf %37, %40 : vector<16x1xf32>
      %42 = math.rsqrt %41 : vector<16x1xf32>
      %43 = vector.broadcast %42 : vector<16x1xf32> to vector<16x32xf32>
      %44 = arith.mulf %39, %43 : vector<16x32xf32>
      %c0_24 = arith.constant 0 : index
      %c0_25 = arith.constant 0 : index
      %45 = vector.load %arg3[%c0_24, %c0_25] : memref<1x32xf32, #tpu.memory_space<vmem>>, vector<1x32xf32>
      %46 = vector.broadcast %45 : vector<1x32xf32> to vector<16x32xf32>
      %47 = arith.mulf %44, %46 : vector<16x32xf32>
      %c0_26 = arith.constant 0 : index
      %c0_27 = arith.constant 0 : index
      %48 = vector.load %arg4[%c0_26, %c0_27] : memref<1x32xf32, #tpu.memory_space<vmem>>, vector<1x32xf32>
      %49 = vector.broadcast %48 : vector<1x32xf32> to vector<16x32xf32>
      %50 = arith.addf %47, %49 : vector<16x32xf32>
      %51 = arith.truncf %50 : vector<16x32xf32> to vector<16x32xbf16>
      %c0_28 = arith.constant 0 : index
      %c0_29 = arith.constant 0 : index
      %52 = vector.load %arg11[%c0_28, %c0_29] : memref<16x32xbf16, #tpu.memory_space<vmem>>, vector<16x32xbf16>
      tpu.vector_store %arg11[%c0_28, %c0_29], %51 {strides = array<i32>} : memref<16x32xbf16, #tpu.memory_space<vmem>>, vector<16x32xbf16>,
      %cst_30 = arith.constant 0.000000e+00 : f32
      %53 = vector.broadcast %cst_30 : f32 to vector<16x32xf32>
      %c0_31 = arith.constant 0 : index
      %c0_32 = arith.constant 0 : index
      %54 = vector.load %arg12[%c0_31, %c0_32] : memref<16x32xf32, #tpu.memory_space<vmem>>, vector<16x32xf32>
      tpu.vector_store %arg12[%c0_31, %c0_32], %53 {strides = array<i32>} : memref<16x32xf32, #tpu.memory_space<vmem>>, vector<16x32xf32>,
    } else {
    }
    %c0 = arith.constant 0 : index
    %c0_1 = arith.constant 0 : index
    %3 = vector.load %arg11[%c0, %c0_1] : memref<16x32xbf16, #tpu.memory_space<vmem>>, vector<16x32xbf16>
    %c0_2 = arith.constant 0 : index
    %c0_3 = arith.constant 0 : index
    %4 = vector.load %arg5[%c0_2, %c0_3] : memref<32x128xbf16, #tpu.memory_space<vmem>>, vector<32x128xbf16>
    %cst = arith.constant dense<0.000000e+00> : vector<16x128xf32>
    %5 = tpu.matmul %3, %4, %cst {dimension_numbers = #tpu.dot_dimension_numbers<[1], [0], [0], [1], [0, 0, 1, 1], [], []>} : vector<16x32xbf16>, vector<32x128xbf16>, vector<16x128xf32> -> vector<16x128xf32>
    %c0_4 = arith.constant 0 : index
    %c0_5 = arith.constant 0 : index
    %6 = vector.load %arg6[%c0_4, %c0_5] : memref<1x128xf32, #tpu.memory_space<vmem>>, vector<1x128xf32>
    %7 = vector.broadcast %6 : vector<1x128xf32> to vector<16x128xf32>
    %8 = arith.addf %5, %7 : vector<16x128xf32>
    %cst_6 = arith.constant 1.702000e+00 : f32
    %9 = vector.broadcast %cst_6 : f32 to vector<16x128xf32>
    %10 = arith.mulf %9, %8 : vector<16x128xf32>
    %11 = arith.negf %10 : vector<16x128xf32>
    %12 = math.exp %11 : vector<16x128xf32>
    %cst_7 = arith.constant 1.000000e+00 : f32
    %13 = vector.broadcast %cst_7 : f32 to vector<16x128xf32>
    %14 = arith.addf %13, %12 : vector<16x128xf32>
    %15 = arith.divf %13, %14 : vector<16x128xf32>
    %16 = arith.mulf %8, %15 : vector<16x128xf32>
    %c0_8 = arith.constant 0 : index
    %c0_9 = arith.constant 0 : index
    %17 = vector.load %arg12[%c0_8, %c0_9] : memref<16x32xf32, #tpu.memory_space<vmem>>, vector<16x32xf32>
    %18 = arith.truncf %16 : vector<16x128xf32> to vector<16x128xbf16>
    %c0_10 = arith.constant 0 : index
    %c0_11 = arith.constant 0 : index
    %19 = vector.load %arg7[%c0_10, %c0_11] : memref<128x32xbf16, #tpu.memory_space<vmem>>, vector<128x32xbf16>
    %cst_12 = arith.constant dense<0.000000e+00> : vector<16x32xf32>
    %20 = tpu.matmul %18, %19, %cst_12 {dimension_numbers = #tpu.dot_dimension_numbers<[1], [0], [0], [1], [0, 0, 1, 1], [], []>} : vector<16x128xbf16>, vector<128x32xbf16>, vector<16x32xf32> -> vector<16x32xf32>
    %21 = arith.addf %17, %20 : vector<16x32xf32>
    %c0_13 = arith.constant 0 : index
    %c0_14 = arith.constant 0 : index
    %22 = vector.load %arg12[%c0_13, %c0_14] : memref<16x32xf32, #tpu.memory_space<vmem>>, vector<16x32xf32>
    tpu.vector_store %arg12[%c0_13, %c0_14], %21 {strides = array<i32>} : memref<16x32xf32, #tpu.memory_space<vmem>>, vector<16x32xf32>,
    %c0_i32_15 = arith.constant 0 : i32
    %23 = arith.cmpi eq, %arg1, %c0_i32_15 : i32
    %24 = arith.extui %23 : i1 to i32
    %c0_i32_16 = arith.constant 0 : i32
    %25 = arith.cmpi ne, %24, %c0_i32_16 : i32
    scf.if %25 {
      %c0_17 = arith.constant 0 : index
      %c0_18 = arith.constant 0 : index
      %26 = vector.load %arg12[%c0_17, %c0_18] : memref<16x32xf32, #tpu.memory_space<vmem>>, vector<16x32xf32>
      %c0_19 = arith.constant 0 : index
      %c0_20 = arith.constant 0 : index
      %27 = vector.load %arg8[%c0_19, %c0_20] : memref<1x32xf32, #tpu.memory_space<vmem>>, vector<1x32xf32>
      %28 = vector.broadcast %27 : vector<1x32xf32> to vector<16x32xf32>
      %29 = arith.addf %26, %28 : vector<16x32xf32>
      %c0_21 = arith.constant 0 : index
      %c0_22 = arith.constant 0 : index
      %30 = vector.load %arg9[%c0_21, %c0_22] : memref<16x32xf32, #tpu.memory_space<vmem>>, vector<16x32xf32>
      %31 = arith.addf %29, %30 : vector<16x32xf32>
      %c0_23 = arith.constant 0 : index
      %c0_24 = arith.constant 0 : index
      %32 = vector.load %arg10[%c0_23, %c0_24] : memref<16x32xf32, #tpu.memory_space<vmem>>, vector<16x32xf32>
      tpu.vector_store %arg10[%c0_23, %c0_24], %31 {strides = array<i32>} : memref<16x32xf32, #tpu.memory_space<vmem>>, vector<16x32xf32>,
    } else {
    }
    return
  }
  func.func @transform_0(%arg0: i32, %arg1: i32) -> (i32, i32) {
    %c0_i32 = arith.constant 0 : i32
    %c0_i32_0 = arith.constant 0 : i32
    return %arg0, %c0_i32 : i32, i32
  }
  func.func @transform_1(%arg0: i32, %arg1: i32) -> (i32, i32) {
    %c0_i32 = arith.constant 0 : i32
    %c0_i32_0 = arith.constant 0 : i32
    %c0_i32_1 = arith.constant 0 : i32
    return %c0_i32, %c0_i32_0 : i32, i32
  }
  func.func @transform_2(%arg0: i32, %arg1: i32) -> (i32, i32) {
    %c0_i32 = arith.constant 0 : i32
    %c0_i32_0 = arith.constant 0 : i32
    %c0_i32_1 = arith.constant 0 : i32
    return %c0_i32, %c0_i32_0 : i32, i32
  }
  func.func @transform_3(%arg0: i32, %arg1: i32) -> (i32, i32) {
    %c0_i32 = arith.constant 0 : i32
    %c0_i32_0 = arith.constant 0 : i32
    return %c0_i32, %arg1 : i32, i32
  }
  func.func @transform_4(%arg0: i32, %arg1: i32) -> (i32, i32) {
    %c0_i32 = arith.constant 0 : i32
    %c0_i32_0 = arith.constant 0 : i32
    return %c0_i32, %arg1 : i32, i32
  }
  func.func @transform_5(%arg0: i32, %arg1: i32) -> (i32, i32) {
    %c0_i32 = arith.constant 0 : i32
    %c0_i32_0 = arith.constant 0 : i32
    return %arg1, %c0_i32 : i32, i32
  }
  func.func @transform_6(%arg0: i32, %arg1: i32) -> (i32, i32) {
    %c0_i32 = arith.constant 0 : i32
    %c0_i32_0 = arith.constant 0 : i32
    %c0_i32_1 = arith.constant 0 : i32
    return %c0_i32, %c0_i32_0 : i32, i32
  }
  func.func @transform_7(%arg0: i32, %arg1: i32) -> (i32, i32) {
    %c0_i32 = arith.constant 0 : i32
    %c0_i32_0 = arith.constant 0 : i32
    return %arg0, %c0_i32 : i32, i32
  }
  func.func @transform_8(%arg0: i32, %arg1: i32) -> (i32, i32) {
    %c0_i32 = arith.constant 0 : i32
    %c0_i32_0 = arith.constant 0 : i32
    return %arg0, %c0_i32 : i32, i32
  }
}

module attributes {stable_mosaic.version = 11 : i64} {
  func.func @kernel(%arg0: i32, %arg1: i32, %arg2: memref<16x32xbf16, #tpu.memory_space<vmem>>, %arg3: memref<32x128xbf16, #tpu.memory_space<vmem>>, %arg4: memref<1x128xf32, #tpu.memory_space<vmem>>, %arg5: memref<16x128xf32, #tpu.memory_space<vmem>>, %arg6: memref<16x128xf32, #tpu.memory_space<vmem>>) attributes {dimension_semantics = [#tpu.dimension_semantics<parallel>, #tpu.dimension_semantics<parallel>], iteration_bounds = array<i64: 1, 1>, scalar_prefetch = 0 : i64, scratch_operands = 0 : i64, tpu.core_type = #tpu.core_type<tc>, window_params = [{transform_indices = @transform_0, window_bounds = array<i64: 16, 32>}, {transform_indices = @transform_1, window_bounds = array<i64: 32, 128>}, {transform_indices = @transform_2, window_bounds = array<i64: 1, 128>}, {transform_indices = @transform_3, window_bounds = array<i64: 16, 128>}, {transform_indices = @transform_4, window_bounds = array<i64: 16, 128>}]} {
    %c0 = arith.constant 0 : index
    %c0_0 = arith.constant 0 : index
    %0 = vector.load %arg2[%c0, %c0_0] : memref<16x32xbf16, #tpu.memory_space<vmem>>, vector<16x32xbf16>
    %c0_1 = arith.constant 0 : index
    %c0_2 = arith.constant 0 : index
    %1 = vector.load %arg3[%c0_1, %c0_2] : memref<32x128xbf16, #tpu.memory_space<vmem>>, vector<32x128xbf16>
    %cst = arith.constant dense<0.000000e+00> : vector<16x128xf32>
    %2 = tpu.matmul %0, %1, %cst {dimension_numbers = #tpu.dot_dimension_numbers<[1], [0], [0], [1], [0, 0, 1, 1], [], []>} : vector<16x32xbf16>, vector<32x128xbf16>, vector<16x128xf32> -> vector<16x128xf32>
    %c0_3 = arith.constant 0 : index
    %c0_4 = arith.constant 0 : index
    %3 = vector.load %arg4[%c0_3, %c0_4] : memref<1x128xf32, #tpu.memory_space<vmem>>, vector<1x128xf32>
    %4 = vector.broadcast %3 : vector<1x128xf32> to vector<16x128xf32>
    %5 = arith.addf %2, %4 : vector<16x128xf32>
    %c0_5 = arith.constant 0 : index
    %c0_6 = arith.constant 0 : index
    %6 = vector.load %arg5[%c0_5, %c0_6] : memref<16x128xf32, #tpu.memory_space<vmem>>, vector<16x128xf32>
    %7 = arith.addf %5, %6 : vector<16x128xf32>
    %c0_7 = arith.constant 0 : index
    %c0_8 = arith.constant 0 : index
    %8 = vector.load %arg6[%c0_7, %c0_8] : memref<16x128xf32, #tpu.memory_space<vmem>>, vector<16x128xf32>
    tpu.vector_store %arg6[%c0_7, %c0_8], %7 {strides = array<i32>} : memref<16x128xf32, #tpu.memory_space<vmem>>, vector<16x128xf32>,
    return
  }
  func.func @transform_0(%arg0: i32, %arg1: i32) -> (i32, i32) {
    %c0_i32 = arith.constant 0 : i32
    %c0_i32_0 = arith.constant 0 : i32
    return %arg0, %c0_i32 : i32, i32
  }
  func.func @transform_1(%arg0: i32, %arg1: i32) -> (i32, i32) {
    %c0_i32 = arith.constant 0 : i32
    %c0_i32_0 = arith.constant 0 : i32
    return %c0_i32, %arg1 : i32, i32
  }
  func.func @transform_2(%arg0: i32, %arg1: i32) -> (i32, i32) {
    %c0_i32 = arith.constant 0 : i32
    %c0_i32_0 = arith.constant 0 : i32
    return %c0_i32, %arg1 : i32, i32
  }
  func.func @transform_3(%arg0: i32, %arg1: i32) -> (i32, i32) {
    %c0_i32 = arith.constant 0 : i32
    return %arg0, %arg1 : i32, i32
  }
  func.func @transform_4(%arg0: i32, %arg1: i32) -> (i32, i32) {
    %c0_i32 = arith.constant 0 : i32
    return %arg0, %arg1 : i32, i32
  }
}

module attributes {stable_mosaic.version = 11 : i64} {
  func.func @_layernorm_kernel(%arg0: i32, %arg1: memref<8x32xf32, #tpu.memory_space<vmem>>, %arg2: memref<1x32xf32, #tpu.memory_space<vmem>>, %arg3: memref<1x32xf32, #tpu.memory_space<vmem>>, %arg4: memref<8x32xf32, #tpu.memory_space<vmem>>) attributes {dimension_semantics = [#tpu.dimension_semantics<parallel>], iteration_bounds = array<i64: 1>, scalar_prefetch = 0 : i64, scratch_operands = 0 : i64, tpu.core_type = #tpu.core_type<tc>, window_params = [{transform_indices = @transform_0, window_bounds = array<i64: 8, 32>}, {pipeline_mode = #tpu.pipeline_mode<synchronous>, transform_indices = @transform_1, window_bounds = array<i64: 1, 32>}, {pipeline_mode = #tpu.pipeline_mode<synchronous>, transform_indices = @transform_2, window_bounds = array<i64: 1, 32>}, {transform_indices = @transform_3, window_bounds = array<i64: 8, 32>}]} {
    %c0 = arith.constant 0 : index
    %c0_0 = arith.constant 0 : index
    %0 = vector.load %arg1[%c0, %c0_0] : memref<8x32xf32, #tpu.memory_space<vmem>>, vector<8x32xf32>
    %cst = arith.constant dense<0.000000e+00> : vector<8xf32>
    %1 = vector.multi_reduction <add>, %0, %cst [1] : vector<8x32xf32> to vector<8xf32>
    %2 = vector.shape_cast %1 : vector<8xf32> to vector<8x1xf32>
    %cst_1 = arith.constant 3.200000e+01 : f32
    %3 = vector.broadcast %cst_1 : f32 to vector<8x1xf32>
    %4 = arith.divf %2, %3 : vector<8x1xf32>
    %5 = vector.broadcast %4 : vector<8x1xf32> to vector<8x32xf32>
    %6 = arith.subf %0, %5 : vector<8x32xf32>
    %7 = arith.mulf %6, %6 : vector<8x32xf32>
    %cst_2 = arith.constant dense<0.000000e+00> : vector<8xf32>
    %8 = vector.multi_reduction <add>, %7, %cst_2 [1] : vector<8x32xf32> to vector<8xf32>
    %9 = vector.shape_cast %8 : vector<8xf32> to vector<8x1xf32>
    %cst_3 = arith.constant 3.200000e+01 : f32
    %10 = vector.broadcast %cst_3 : f32 to vector<8x1xf32>
    %11 = arith.divf %9, %10 : vector<8x1xf32>
    %12 = vector.broadcast %4 : vector<8x1xf32> to vector<8x32xf32>
    %13 = arith.subf %0, %12 : vector<8x32xf32>
    %cst_4 = arith.constant 9.99999974E-6 : f32
    %14 = vector.broadcast %cst_4 : f32 to vector<8x1xf32>
    %15 = arith.addf %11, %14 : vector<8x1xf32>
    %16 = math.rsqrt %15 : vector<8x1xf32>
    %17 = vector.broadcast %16 : vector<8x1xf32> to vector<8x32xf32>
    %18 = arith.mulf %13, %17 : vector<8x32xf32>
    %c0_5 = arith.constant 0 : index
    %c0_6 = arith.constant 0 : index
    %19 = vector.load %arg2[%c0_5, %c0_6] : memref<1x32xf32, #tpu.memory_space<vmem>>, vector<1x32xf32>
    %20 = vector.broadcast %19 : vector<1x32xf32> to vector<8x32xf32>
    %21 = arith.mulf %18, %20 : vector<8x32xf32>
    %c0_7 = arith.constant 0 : index
    %c0_8 = arith.constant 0 : index
    %22 = vector.load %arg3[%c0_7, %c0_8] : memref<1x32xf32, #tpu.memory_space<vmem>>, vector<1x32xf32>
    %23 = vector.broadcast %22 : vector<1x32xf32> to vector<8x32xf32>
    %24 = arith.addf %21, %23 : vector<8x32xf32>
    %c0_9 = arith.constant 0 : index
    %c0_10 = arith.constant 0 : index
    %25 = vector.load %arg4[%c0_9, %c0_10] : memref<8x32xf32, #tpu.memory_space<vmem>>, vector<8x32xf32>
    tpu.vector_store %arg4[%c0_9, %c0_10], %24 {strides = array<i32>} : memref<8x32xf32, #tpu.memory_space<vmem>>, vector<8x32xf32>,
    return
  }
  func.func @transform_0(%arg0: i32) -> (i32, i32) {
    %c0_i32 = arith.constant 0 : i32
    %c0_i32_0 = arith.constant 0 : i32
    return %arg0, %c0_i32 : i32, i32
  }
  func.func @transform_1(%arg0: i32) -> (i32, i32) {
    %c0_i32 = arith.constant 0 : i32
    %c0_i32_0 = arith.constant 0 : i32
    %c0_i32_1 = arith.constant 0 : i32
    return %c0_i32, %c0_i32_0 : i32, i32
  }
  func.func @transform_2(%arg0: i32) -> (i32, i32) {
    %c0_i32 = arith.constant 0 : i32
    %c0_i32_0 = arith.constant 0 : i32
    %c0_i32_1 = arith.constant 0 : i32
    return %c0_i32, %c0_i32_0 : i32, i32
  }
  func.func @transform_3(%arg0: i32) -> (i32, i32) {
    %c0_i32 = arith.constant 0 : i32
    %c0_i32_0 = arith.constant 0 : i32
    return %arg0, %c0_i32 : i32, i32
  }
}

</mosaic_0001>

<bundles_post_ra>
// kernel: image_encoder_forward.12
= control target key start
LH: loop header
LB: loop body
LE: loop exit
PB: predicated region body
PF: predicated region fallthrough
CT: control target
= control target key end

     0   :  { %vm16_vm0 = vcmask 261120   ;;  %s118_s0 = inlined_call_operand.vmem [shape: f32[16,32], index: 0, kind: input, shape index: {}]   ;;  %s119_s1 = inlined_call_operand.vmem [shape: f32[1,32], index: 1, kind: input, shape index: {}]   ;;  %s120_s2 = inlined_call_operand.vmem [shape: f32[1,32], index: 2, kind: input, shape index: {}]   ;;  %s121_s3 = inlined_call_operand.vmem [shape: f32[16,32], index: 3, kind: output, shape index: {}]  }
   0x1   :  { %v14_v0 = vld [vmem:[%s118_s0] sm:$0xff]  ;;  %v15_v1 = vld [vmem:[%s118_s0 + $0x8] sm:$0xff] }
   0x2   :  { %v17_v2 = vsel %vm16_vm0, %v14_v0, 0.0  ;;  %v20_v3 = vsel %vm16_vm0, %v15_v1, 0.0  ;;  %v68_v21 = vld [vmem:[%s119_s1] ss:$0 sm:$0xff] }
   0x3   :  { %18 = vadd.xlane.f32.xlu0 %v17_v2  ;;  %v69_v23 = vld [vmem:[%s120_s2] ss:$0 sm:$0xff] }
   0x7   :  { %21 = vadd.xlane.f32.xlu0 %v20_v3 }
  0x90   :  { %v19_v4 = vpop.xlane.xlu0 %18 }
  0x91   :  { %v24_v5 = vmul.f32 0.03125, %v19_v4 }
  0x93   :  { %v26_v6 = vsub.f32 %v14_v0, %v24_v5 }
  0x94   :  { %v22_v7 = vpop.xlane.xlu0 %21 }
  0x95   :  { %v25_v8 = vmul.f32 0.03125, %v22_v7  ;;  %v28_v9 = vmul.f32 %v26_v6, %v26_v6 }
  0x97   :  { %v27_v10 = vsub.f32 %v15_v1, %v25_v8  ;;  %v30_v11 = vsel %vm16_vm0, %v28_v9, 0.0 }
  0x98   :  { %31 = vadd.xlane.f32.xlu1 %v30_v11 }
  0x99   :  { %v29_v12 = vmul.f32 %v27_v10, %v27_v10 }
  0x9b   :  { %v33_v13 = vsel %vm16_vm0, %v29_v12, 0.0 }
  0x9c   :  { %34 = vadd.xlane.f32.xlu1 %v33_v13 }
 0x125   :  { %v32_v14 = vpop.xlane.xlu1 %31 }
 0x126   :  { %v36_v15 = vmul.f32 0.03125, %v32_v14 }
 0x128   :  { %v38_v16 = vadd.f32 1e-05, %v36_v15 }
 0x129   :  { %v35_v17 = vpop.xlane.xlu1 %34 }
 0x12a   :  { %70 = vrsqrt.f32 %v38_v16  ;;  %v37_v18 = vmul.f32 0.03125, %v35_v17 }
 0x12c   :  { %v39_v19 = vadd.f32 1e-05, %v37_v18 }
 0x12e   :  { %72 = vrsqrt.f32 %v39_v19 }
 0x134   :  { %v71_v20 = vpop.eup %70 }
 0x135   :  { %v42_v22 = vmul.f32 %v71_v20, %v26_v6 }
 0x137   :  { %v51_v24 = vmul.f32 %v68_v21, %v42_v22 }
 0x138   :  { %v73_v25 = vpop.eup %72 }
 0x139   :  { %v60_v26 = vadd.f32 %v69_v23, %v51_v24  ;;  %v43_v27 = vmul.f32 %v73_v25, %v27_v10 }
 0x13b   :  { %62 = vst.msk [vmem:[%s121_s3] sm:$0xff] %vm16_vm0, %v60_v26  ;;  %v52_v28 = vmul.f32 %v68_v21, %v43_v27 }
 0x13d   :  { %v61_v29 = vadd.f32 %v69_v23, %v52_v28 }
 0x13f   :  { %63 = vst.msk [vmem:[%s121_s3 + $0x8] sm:$0xff] %vm16_vm0, %v61_v29 }

// kernel: image_encoder_forward.11
= control target key start
LH: loop header
LB: loop body
LE: loop exit
PB: predicated region body
PF: predicated region fallthrough
CT: control target
= control target key end

     0   :  { %s334_s1 = inlined_call_operand.vmem [shape: bf16[256,128], index: 1, kind: input, shape index: {}]   ;;  %s335_s0 = inlined_call_operand.vmem [shape: f32[8,256], index: 0, kind: input, shape index: {}]   ;;  %s336_s2 = inlined_call_operand.vmem [shape: f32[1,128], index: 2, kind: input, shape index: {}]   ;;  %s337_s3 = inlined_call_operand.vmem [shape: f32[8,128], index: 3, kind: output, shape index: {}]  }
   0x1   :  { %v238_v0 = vld [vmem:[%s334_s1 + $0x40] sm:$0xff]   ;;  %v240_v2 = vld [vmem:[%s334_s1 + $0x48] sm:$0xff]   ;;  %v242_v4 = vld [vmem:[%s334_s1 + $0x50] sm:$0xff]  }
   0x2   :  { %v239_v1 = vld [vmem:[%s334_s1] sm:$0xff]   ;;  %216 = vmatprep.subr.bf16.mxu0 %v238_v0  ;;  %v241_v3 = vld [vmem:[%s334_s1 + $0x8] sm:$0xff]   ;;  %v243_v5 = vld [vmem:[%s334_s1 + $0x10] sm:$0xff]  }
   0x3   :  { %217 = vmatpush3.bf16.msra.mxu0 %v239_v1  ;;  %v244_v6 = vld [vmem:[%s334_s1 + $0x58] sm:$0xff]   ;;  %v246_v8 = vld [vmem:[%s334_s1 + $0x60] sm:$0xff]   ;;  %v248_v10 = vld [vmem:[%s334_s1 + $0x68] sm:$0xff]  }
   0x4   :  { %218 = vmatprep.subr.bf16.mxu0 %v240_v2  ;;  %v245_v7 = vld [vmem:[%s334_s1 + $0x18] sm:$0xff]   ;;  %v247_v9 = vld [vmem:[%s334_s1 + $0x20] sm:$0xff]   ;;  %v16_v11 = vld [vmem:[%s335_s0 + $0x8] sm:$0xff] }
   0x5   :  { %v18_v12 = vpack.c.bf16 %v16_v11, %v16_v11  ;;  %v249_v13 = vld [vmem:[%s334_s1 + $0x28] sm:$0xff]   ;;  %v250_v14 = vld [vmem:[%s334_s1 + $0x70] sm:$0xff]   ;;  %v252_v16 = vld [vmem:[%s334_s1 + $0x78] sm:$0xff]  }
   0x6   :  { %v251_v15 = vld [vmem:[%s334_s1 + $0x30] sm:$0xff]   ;;  %v253_v17 = vld [vmem:[%s334_s1 + $0x38] sm:$0xff]   ;;  %v15_v18 = vld [vmem:[%s335_s0] sm:$0xff] }
   0x7   :  { %219 = vmatpush3.bf16.msra.mxu0 %v241_v3  ;;  %186 = vmatprep.mubr.bf16.mxu0 %v18_v12  ;;  %v17_v19 = vpack.c.bf16 %v15_v18, %v15_v18  ;;  %v199_v21 = vld [vmem:[%s336_s2] ss:$0 sm:$0xff] }
   0x8   :  { %220 = vmatprep.subr.bf16.mxu0 %v242_v4 }
   0xb   :  { %221 = vmatpush3.bf16.msra.mxu0 %v243_v5 }
   0xc   :  { %222 = vmatprep.subr.bf16.mxu0 %v244_v6 }
   0xf   :  { %223 = vmatpush3.bf16.msra.mxu0 %v245_v7 }
  0x10   :  { %224 = vmatprep.subr.bf16.mxu0 %v246_v8 }
  0x13   :  { %225 = vmatpush3.bf16.msra.mxu0 %v247_v9 }
  0x14   :  { %226 = vmatprep.subr.bf16.mxu0 %v248_v10 }
  0x17   :  { %227 = vmatpush3.bf16.msra.mxu0 %v249_v13 }
  0x18   :  { %228 = vmatprep.subr.bf16.mxu0 %v250_v14 }
  0x1b   :  { %229 = vmatpush3.bf16.msra.mxu0 %v251_v15 }
  0x1c   :  { %230 = vmatprep.subr.bf16.mxu0 %v252_v16 }
  0x1f   :  { %231 = vmatpush3.bf16.msra.mxu0 %v253_v17 }
  0x22   :  { %187 = vmatmul.mubr.bf16.vlgmr.msra.gmra.mrb[0].mxu0 %v17_v19 }
  0xf5   :  { %v232_v20 = vpop.f32.mrb[0].mxu0 }
  0xf6   :  { %v233_v22 = vpop.f32.mrb[1].mxu0 }
  0xf7   :  { %v234_v23 = vadd.f32 %v233_v22, %v232_v20  ;;  %v235_v24 = vpop.f32.mrb[2].mxu0 }
  0xf8   :  { %v236_v25 = vpop.f32.mrb[3].mxu0 }
  0xf9   :  { %v189_v26 = vadd.f32 %v234_v23, %v199_v21 }
  0xfb   :  { %194 = vst [vmem:[%s337_s3] sm:$0xff] %v189_v26 }

// kernel: image_encoder_forward.14
= control target key start
LH: loop header
LB: loop body
LE: loop exit
PB: predicated region body
PF: predicated region fallthrough
CT: control target
= control target key end

     0   :  { %s898_s12 = smov 0   ;;  %s993_s0 = inlined_call_operand.vmem [shape: bf16[2,4,5,8], index: 0, kind: input, shape index: {}]   ;;  %s994_s1 = inlined_call_operand.vmem [shape: bf16[2,4,5,8], index: 1, kind: input, shape index: {}]   ;;  %s995_s2 = inlined_call_operand.vmem [shape: bf16[2,4,5,8], index: 2, kind: input, shape index: {}]   ;;  %s996_s3 = inlined_call_operand.vmem [shape: bf16[2,4,5,8], index: 3, kind: output, shape index: {}]  }
   0x1 LB: > { %s749_s13 = sadd.s32 4294967295, %s873_s12   ;;  %p753_p0 = scmp.ge.s32.totalorder %s873_s12, 1  ;;  %s873_s12 = sphi %s898_s12, %s13_s12  }
   0x2   : > { %p157_p1 = scmp.lt.s32.totalorder %s873_s12, 3 }
   0x4   : > { %p158_p2 = pnand %p753_p0, %p157_p1 }
   0x5   : > { %p191_p3 = scmp.lt.s32.totalorder (!%p158_p2), %s749_s13, 1  ;;  %v875_v0 = vmov (!%p158_p2), 0.0   ;;  %vm876_vm0 = vmmov (!%p158_p2), 0   ;;  %vm224_vm1 = vcmask (!%p158_p2), 64512   ;;  %vm413_vm2 = vcmask (!%p158_p2), 36864  }
   0x6   : > { %161 = sbr.rel (%p158_p2) target bundleno = 783 (0x30f), region = 32  ;;  %792 = vmatprep.subr.bf16.mxu0 (!%p158_p2), %v875_v0  ;;  %798 = vmatprep.subr.bf16.mxu1 (!%p158_p2), %v875_v0  ;;  %vm466_vm3 = vcmask (!%p158_p2), 1041408   ;;  %vm467_vm4 = vcmask (!%p158_p2), 1042432   ;;  %v877_v57 = vmov (!%p158_p2), 65535   ;;  %vm462_vm5 = vcmask (!%p158_p2), 39936  }
   0x7   : > { %794 = vmatprep.mubr.msk.bf16.mxu0 (!%p158_p2), %vm876_vm0, %v875_v0  ;;  %800 = vmatprep.mubr.msk.bf16.mxu1 (!%p158_p2), %vm876_vm0, %v875_v0  ;;  %v468_v58 = vsel (!%p158_p2), %vm466_vm3, 4294967295, %v877_v57  ;;  %vm655_vm6 = vcmask (!%p158_p2), 59392   ;;  %vm656_vm7 = vsmask.f32 (!%p158_p2), 2304 }
   0x8   : > { %v469_v60 = vsel (!%p158_p2), %vm467_vm4, %v468_v58, 0  ;;  %vm970_vm8 = vmand (!%p158_p2), %vm655_vm6, %vm656_vm7 }
   0xd   : > { %s1000_s13 = smov (!%p191_p3, %s749_s13), 1 }
   0xe   : > { %s912_s14 = sshll.u32 %s1000_s13, 4 }
   0xf   : > { %s200_s17 = scalar_lea.vmem %s994_s1, %s912_s14  ;;  %s195_s20 = scalar_lea.vmem %s993_s0, %s912_s14 }
  0x10   : > { %v216_v1 = vld [vmem:[%s200_s17] sm:$0x7]  ;;  %v217_v2 = vld [vmem:[%s200_s17 + $0x4] sm:$0x7]  ;;  %v218_v5 = vld [vmem:[%s200_s17 + $0x8] sm:$0x7]  ;;  %s205_s23 = scalar_lea.vmem %s995_s2, %s912_s14  ;;  %s968_s26 = scalar_lea.vmem %s996_s3, %s912_s14 }
  0x11   : > { %v229_v3 = vsel %vm224_vm1, %v216_v1, 0  ;;  %v275_v4 = vsel %vm224_vm1, %v217_v2, 0  ;;  %v219_v6 = vld [vmem:[%s200_s17 + $0xc] sm:$0x7]  ;;  %v212_v7 = vld [vmem:[%s195_s20] sm:$0x7] }
  0x12   : > { %793 = vmatpush3.bf16.xpose.msra.mxu0 %v229_v3  ;;  %799 = vmatpush3.bf16.xpose.msra.mxu1 %v275_v4  ;;  %v213_v8 = vld [vmem:[%s195_s20 + $0x4] sm:$0x7]  ;;  %v321_v9 = vsel %vm224_vm1, %v218_v5, 0  ;;  %v367_v10 = vsel %vm224_vm1, %v219_v6, 0  ;;  %v214_v11 = vld [vmem:[%s195_s20 + $0x8] sm:$0x7] }
  0x13   : > { %804 = vmatprep.subr.bf16.mxu0 %v875_v0  ;;  %810 = vmatprep.subr.bf16.mxu1 %v875_v0  ;;  %v215_v12 = vld [vmem:[%s195_s20 + $0xc] sm:$0x7]  ;;  %v220_v59 = vld [vmem:[%s205_s23] sm:$0x7]  ;;  %v221_v62 = vld [vmem:[%s205_s23 + $0x4] sm:$0x7] }
  0x14   : > { %v471_v61 = vand.u32 %v469_v60, %v220_v59  ;;  %v517_v63 = vand.u32 %v469_v60, %v221_v62  ;;  %v222_v1 = vld [vmem:[%s205_s23 + $0x8] sm:$0x7]  ;;  %v223_v3 = vld [vmem:[%s205_s23 + $0xc] sm:$0x7] }
  0x15   : > { %v563_v2 = vand.u32 %v469_v60, %v222_v1  ;;  %v609_v4 = vand.u32 %v469_v60, %v223_v3 }
  0x19   : > { %795 = vmatmul.mubr.msk.bf16.vlgmr.msra.gmra.mrb[0].mxu0 %vm224_vm1, %v212_v7  ;;  %801 = vmatmul.mubr.msk.bf16.vlgmr.msra.gmra.mrb[0].mxu1 %vm224_vm1, %v213_v8 }
  0x1a   : > { %805 = vmatpush3.bf16.xpose.msra.mxu0 %v321_v9  ;;  %811 = vmatpush3.bf16.xpose.msra.mxu1 %v367_v10 }
  0x1b   : > { %806 = vmatprep.mubr.msk.bf16.mxu0 %vm876_vm0, %v875_v0  ;;  %812 = vmatprep.mubr.msk.bf16.mxu1 %vm876_vm0, %v875_v0 }
  0x1c   : > { %816 = vmatprep.subr.bf16.mxu0 %v875_v0  ;;  %822 = vmatprep.subr.bf16.mxu1 %v875_v0 }
  0x21   : > { %807 = vmatmul.mubr.msk.bf16.vlgmr.msra.gmra.mrb[4].mxu0 %vm224_vm1, %v214_v11  ;;  %813 = vmatmul.mubr.msk.bf16.vlgmr.msra.gmra.mrb[4].mxu1 %vm224_vm1, %v215_v12 }
  0x22   : > { %818 = vmatprep.mubr.msk.bf16.mxu0 %vm876_vm0, %v875_v0  ;;  %824 = vmatprep.mubr.msk.bf16.mxu1 %vm876_vm0, %v875_v0 }
  0x23   : > { %817 = vmatpush3.bf16.msra.mxu0 %v471_v61  ;;  %823 = vmatpush3.bf16.msra.mxu1 %v517_v63 }
  0x24   : > { %828 = vmatprep.subr.bf16.mxu0 %v875_v0  ;;  %834 = vmatprep.subr.bf16.mxu1 %v875_v0 }
  0xec   : > { %v265_v13 = vpop.f32.mrb[0].mxu0  ;;  %v311_v14 = vpop.f32.mrb[0].mxu1 }
  0xed   : > { %v409_v15 = vmul.f32 0.35355338, %v265_v13  ;;  %v796_v16 = vpop.f32.mrb[1].mxu0  ;;  %v410_v17 = vmul.f32 0.35355338, %v311_v14  ;;  %v802_v18 = vpop.f32.mrb[1].mxu1 }
  0xee   : > { %v268_v19 = vpop.f32.mrb[2].mxu0  ;;  %v314_v20 = vpop.f32.mrb[2].mxu1 }
  0xef   : > { %v797_v21 = vpop.f32.mrb[3].mxu0  ;;  %v414_v22 = vsel %vm413_vm2, %v409_v15, -inf  ;;  %v803_v23 = vpop.f32.mrb[3].mxu1  ;;  %v417_v24 = vsel %vm413_vm2, %v410_v17, -inf }
  0xf0   : > { %415 = vmax.xlane.f32.xlu0 %v414_v22  ;;  %v658_v22 = vld [vmem:[%s968_s26] sm:$0x7] }
  0xf4   : > { %418 = vmax.xlane.f32.xlu0 %v417_v24  ;;  %v357_v25 = vpop.f32.mrb[4].mxu0  ;;  %v403_v26 = vpop.f32.mrb[4].mxu1 }
  0xf5   : > { %v411_v27 = vmul.f32 0.35355338, %v357_v25  ;;  %v808_v28 = vpop.f32.mrb[5].mxu0  ;;  %v412_v29 = vmul.f32 0.35355338, %v403_v26  ;;  %v814_v30 = vpop.f32.mrb[5].mxu1 }
  0xf6   : > { %v360_v31 = vpop.f32.mrb[6].mxu0  ;;  %v406_v32 = vpop.f32.mrb[6].mxu1 }
  0xf7   : > { %v809_v33 = vpop.f32.mrb[7].mxu0  ;;  %v420_v34 = vsel %vm413_vm2, %v411_v27, -inf  ;;  %v815_v35 = vpop.f32.mrb[7].mxu1  ;;  %v423_v36 = vsel %vm413_vm2, %v412_v29, -inf }
  0xf8   : > { %421 = vmax.xlane.f32.xlu1 %v420_v34 }
  0xfc   : > { %424 = vmax.xlane.f32.xlu1 %v423_v36  ;;  %v664_v36 = vld [vmem:[%s968_s26 + $0x8] sm:$0x7] }
 0x17d   : > { %v416_v37 = vpop.xlane.xlu0 %415 }
 0x17e   : > { %v426_v38 = vsub.f32 %v409_v15, %v416_v37 }
 0x180   : > { %v430_v39 = vmul.f32 1.442695, %v426_v38 }
 0x181   : > { %v419_v40 = vpop.xlane.xlu0 %418 }
 0x182   : > { %851 = vpow2.f32 %v430_v39  ;;  %v427_v41 = vsub.f32 %v410_v17, %v419_v40 }
 0x184   : > { %v432_v42 = vmul.f32 1.442695, %v427_v41 }
 0x185   : > { %v422_v43 = vpop.xlane.xlu1 %421 }
 0x186   : > { %853 = vpow2.f32 %v432_v42  ;;  %v428_v44 = vsub.f32 %v411_v27, %v422_v43  ;;  %v667_v43 = vld [vmem:[%s968_s26 + $0xc] sm:$0x7] }
 0x188   : > { %v434_v45 = vmul.f32 1.442695, %v428_v44 }
 0x189   : > { %v425_v46 = vpop.xlane.xlu1 %424 }
 0x18a   : > { %855 = vpow2.f32 %v434_v45  ;;  %v429_v47 = vsub.f32 %v412_v29, %v425_v46  ;;  %v661_v29 = vld [vmem:[%s968_s26 + $0x4] sm:$0x7] }
 0x18c   : > { %v852_v48 = vpop.eup %851  ;;  %v436_v49 = vmul.f32 1.442695, %v429_v47 }
 0x18d   : > { %v438_v50 = vsel %vm413_vm2, %v852_v48, 0.0 }
 0x18e   : > { %857 = vpow2.f32 %v436_v49  ;;  %439 = vadd.xlane.f32.xlu0 %v438_v50 }
 0x190   : > { %v854_v51 = vpop.eup %853 }
 0x191   : > { %v441_v52 = vsel %vm413_vm2, %v854_v51, 0.0 }
 0x192   : > { %442 = vadd.xlane.f32.xlu1 %v441_v52 }
 0x194   : > { %v856_v53 = vpop.eup %855 }
 0x195   : > { %v444_v54 = vsel %vm413_vm2, %v856_v53, 0.0 }
 0x196   : > { %445 = vadd.xlane.f32.xlu0 %v444_v54 }
 0x198   : > { %v858_v55 = vpop.eup %857 }
 0x199   : > { %v447_v56 = vsel %vm413_vm2, %v858_v55, 0.0 }
 0x19a   : > { %448 = vadd.xlane.f32.xlu1 %v447_v56 }
 0x21b   : > { %v440_v5 = vpop.xlane.xlu0 %439 }
 0x21c   : > { %859 = vrcp.f32 %v440_v5 }
 0x21f   : > { %v443_v6 = vpop.xlane.xlu1 %442 }
 0x220   : > { %861 = vrcp.f32 %v443_v6 }
 0x223   : > { %v446_v7 = vpop.xlane.xlu0 %445 }
 0x224   : > { %863 = vrcp.f32 %v446_v7 }
 0x226   : > { %v860_v8 = vpop.eup %859 }
 0x227   : > { %v454_v9 = vmul.f32 %v860_v8, %v852_v48  ;;  %v449_v10 = vpop.xlane.xlu1 %448 }
 0x228   : > { %865 = vrcp.f32 %v449_v10 }
 0x229   : > { %v458_v11 = vpack.c.bf16 %v454_v9, %v454_v9 }
 0x22a   : > { %v862_v12 = vpop.eup %861 }
 0x22b   : > { %v455_v13 = vmul.f32 %v862_v12, %v854_v51  ;;  %819 = vmatmul.mubr.msk.bf16.vlgmr.msra.gmra.mrb[8].mxu0 %vm462_vm5, %v458_v11 }
 0x22c   : > { %829 = vmatpush3.bf16.msra.mxu0 %v563_v2  ;;  %830 = vmatprep.mubr.msk.bf16.mxu0 %vm876_vm0, %v875_v0 }
 0x22d   : > { %v459_v14 = vpack.c.bf16 %v455_v13, %v455_v13 }
 0x22e   : > { %v864_v15 = vpop.eup %863 }
 0x22f   : > { %v456_v16 = vmul.f32 %v864_v15, %v856_v53  ;;  %825 = vmatmul.mubr.msk.bf16.vlgmr.msra.gmra.mrb[8].mxu1 %vm462_vm5, %v459_v14 }
 0x230   : > { %835 = vmatpush3.bf16.msra.mxu1 %v609_v4  ;;  %836 = vmatprep.mubr.msk.bf16.mxu1 %vm876_vm0, %v875_v0 }
 0x231   : > { %v460_v17 = vpack.c.bf16 %v456_v16, %v456_v16 }
 0x232   : > { %v866_v18 = vpop.eup %865 }
 0x233   : > { %v457_v19 = vmul.f32 %v866_v18, %v858_v55  ;;  %831 = vmatmul.mubr.msk.bf16.vlgmr.msra.gmra.mrb[12].mxu0 %vm462_vm5, %v460_v17 }
 0x235   : > { %v461_v20 = vpack.c.bf16 %v457_v19, %v457_v19 }
 0x237   : > { %837 = vmatmul.mubr.msk.bf16.vlgmr.msra.gmra.mrb[12].mxu1 %vm462_vm5, %v461_v20 }
 0x2fe   : > { %v507_v21 = vpop.f32.mrb[8].mxu0 }
 0x2ff   : > { %v651_v23 = vpack.c.bf16 %v507_v21, %v507_v21  ;;  %v820_v24 = vpop.f32.mrb[9].mxu0 }
 0x300   : > { %v510_v25 = vpop.f32.mrb[10].mxu0 }
 0x301   : > { %v659_v26 = vsel %vm970_vm8, %v651_v23, %v658_v22  ;;  %v821_v27 = vpop.f32.mrb[11].mxu0 }
 0x302   : > { %660 = vst [vmem:[%s968_s26] sm:$0x7] %v659_v26  ;;  %v553_v28 = vpop.f32.mrb[8].mxu1 }
 0x303   : > { %v652_v30 = vpack.c.bf16 %v553_v28, %v553_v28  ;;  %v826_v31 = vpop.f32.mrb[9].mxu1 }
 0x304   : > { %v556_v32 = vpop.f32.mrb[10].mxu1 }
 0x305   : > { %v662_v33 = vsel %vm970_vm8, %v652_v30, %v661_v29  ;;  %v827_v34 = vpop.f32.mrb[11].mxu1 }
 0x306   : > { %663 = vst [vmem:[%s968_s26 + $0x4] sm:$0x7] %v662_v33  ;;  %v599_v35 = vpop.f32.mrb[12].mxu0 }
 0x307   : > { %v653_v37 = vpack.c.bf16 %v599_v35, %v599_v35  ;;  %v832_v38 = vpop.f32.mrb[13].mxu0 }
 0x308   : > { %v602_v39 = vpop.f32.mrb[14].mxu0 }
 0x309   : > { %v665_v40 = vsel %vm970_vm8, %v653_v37, %v664_v36  ;;  %v833_v41 = vpop.f32.mrb[15].mxu0 }
 0x30a   : > { %666 = vst [vmem:[%s968_s26 + $0x8] sm:$0x7] %v665_v40  ;;  %v645_v42 = vpop.f32.mrb[12].mxu1 }
 0x30b   : > { %v654_v44 = vpack.c.bf16 %v645_v42, %v645_v42  ;;  %v838_v45 = vpop.f32.mrb[13].mxu1 }
 0x30c   : > { %v648_v46 = vpop.f32.mrb[14].mxu1 }
 0x30d   : > { %v668_v47 = vsel %vm970_vm8, %v654_v44, %v667_v43  ;;  %v839_v48 = vpop.f32.mrb[15].mxu1 }
 0x30e   : > { %669 = vst [vmem:[%s968_s26 + $0xc] sm:$0x7] %v668_v47 }
 0x30f PF: > { %s13_s12 = sadd.s32 1, %s873_s12  }
 0x310   : > { %p10_p4 = scmp.ge.s32.totalorder %s13_s12, 4  }
 0x312   :  { %12 = sbr.rel (!%p10_p4) target bundleno = 1 (0x1), region = 68 }

// kernel: image_encoder_forward.13
= control target key start
LH: loop header
LB: loop body
LE: loop exit
PB: predicated region body
PF: predicated region fallthrough
CT: control target
= control target key end

     0   :  { %vm23_vm0 = vcmask 261120   ;;  %v185_v15 = vmov 0.0   ;;  %vm186_vm1 = vmmov 0   ;;  %s246_s0 = inlined_call_operand.vmem [shape: f32[16,32], index: 0, kind: input, shape index: {}]   ;;  %s247_s3 = inlined_call_operand.vmem [shape: bf16[32,128], index: 3, kind: input, shape index: {}]   ;;  %s248_s1 = inlined_call_operand.vmem [shape: f32[1,32], index: 1, kind: input, shape index: {}]   ;;  %s249_s2 = inlined_call_operand.vmem [shape: f32[1,32], index: 2, kind: input, shape index: {}]   ;;  %s250_s4 = inlined_call_operand.vmem [shape: f32[1,128], index: 4, kind: input, shape index: {}]   ;;  %s251_s5 = inlined_call_operand.vmem [shape: bf16[16,128], index: 5, kind: output, shape index: {}]  }
   0x1   :  { %v21_v0 = vld [vmem:[%s246_s0] sm:$0xff]  ;;  %v22_v1 = vld [vmem:[%s246_s0 + $0x8] sm:$0xff]  ;;  %169 = vmatprep.subr.bf16.mxu0 %v185_v15  ;;  %173 = vmatprep.mubr.msk.bf16.mxu0 %vm186_vm1, %v185_v15 }
   0x2   :  { %v24_v2 = vsel %vm23_vm0, %v21_v0, 0.0  ;;  %v27_v3 = vsel %vm23_vm0, %v22_v1, 0.0  ;;  %v179_v14 = vld [vmem:[%s247_s3] sm:$0xff]   ;;  %v180_v16 = vld [vmem:[%s247_s3 + $0x8] sm:$0xff]  }
   0x3   :  { %25 = vadd.xlane.f32.xlu0 %v24_v2  ;;  %170 = vmatpush3.bf16.msra.mxu0 %v179_v14  ;;  %v151_v25 = vld [vmem:[%s248_s1] ss:$0 sm:$0xff] }
   0x4   :  { %171 = vmatprep.subr.bf16.mxu0 %v185_v15  ;;  %v152_v29 = vld [vmem:[%s249_s2] ss:$0 sm:$0xff] }
   0x5   :  { %v153_v34 = vld [vmem:[%s250_s4] ss:$0 sm:$0xff] }
   0x7   :  { %28 = vadd.xlane.f32.xlu0 %v27_v3  ;;  %172 = vmatpush3.bf16.msra.mxu0 %v180_v16 }
  0x90   :  { %v26_v4 = vpop.xlane.xlu0 %25 }
  0x91   :  { %v31_v5 = vmul.f32 0.03125, %v26_v4 }
  0x93   :  { %v33_v6 = vsub.f32 %v21_v0, %v31_v5 }
  0x94   :  { %v29_v7 = vpop.xlane.xlu0 %28 }
  0x95   :  { %v32_v8 = vmul.f32 0.03125, %v29_v7  ;;  %v35_v9 = vmul.f32 %v33_v6, %v33_v6 }
  0x97   :  { %v34_v10 = vsub.f32 %v22_v1, %v32_v8  ;;  %v37_v11 = vsel %vm23_vm0, %v35_v9, 0.0 }
  0x98   :  { %38 = vadd.xlane.f32.xlu1 %v37_v11 }
  0x99   :  { %v36_v12 = vmul.f32 %v34_v10, %v34_v10 }
  0x9b   :  { %v40_v13 = vsel %vm23_vm0, %v36_v12, 0.0 }
  0x9c   :  { %41 = vadd.xlane.f32.xlu1 %v40_v13 }
 0x125   :  { %v39_v17 = vpop.xlane.xlu1 %38 }
 0x126   :  { %v43_v18 = vmul.f32 0.03125, %v39_v17 }
 0x128   :  { %v45_v19 = vadd.f32 1e-05, %v43_v18 }
 0x129   :  { %v42_v20 = vpop.xlane.xlu1 %41 }
 0x12a   :  { %181 = vrsqrt.f32 %v45_v19  ;;  %v44_v21 = vmul.f32 0.03125, %v42_v20 }
 0x12c   :  { %v46_v22 = vadd.f32 1e-05, %v44_v21 }
 0x12e   :  { %183 = vrsqrt.f32 %v46_v22 }
 0x134   :  { %v182_v23 = vpop.eup %181 }
 0x135   :  { %v49_v24 = vmul.f32 %v182_v23, %v33_v6 }
 0x137   :  { %v58_v28 = vmul.f32 %v151_v25, %v49_v24 }
 0x138   :  { %v184_v26 = vpop.eup %183 }
 0x139   :  { %v50_v27 = vmul.f32 %v184_v26, %v34_v10  ;;  %v67_v31 = vadd.f32 %v152_v29, %v58_v28 }
 0x13b   :  { %v59_v30 = vmul.f32 %v151_v25, %v50_v27 }
 0x13d   :  { %v68_v32 = vadd.f32 %v152_v29, %v59_v30 }
 0x13f   :  { %v69_v33 = vpack.c.bf16 %v68_v32, %v67_v31 }
 0x141   :  { %174 = vmatmul.mubr.msk.bf16.vlgmr.msra.gmra.mrb[0].mxu0 %vm23_vm0, %v69_v33 }
 0x214   :  { %v130_v35 = vpop.f32.mrb[0].mxu0 }
 0x215   :  { %v175_v36 = vpop.f32.mrb[1].mxu0  ;;  %v131_v38 = vadd.f32 %v153_v34, %v130_v35 }
 0x216   :  { %v133_v37 = vpop.f32.mrb[2].mxu0 }
 0x217   :  { %v134_v39 = vadd.f32 %v153_v34, %v133_v37  ;;  %v176_v40 = vpop.f32.mrb[3].mxu0 }
 0x219   :  { %v164_v41 = vpack.c.bf16 %v134_v39, %v131_v38 }
 0x21b   :  { %165 = vst [vmem:[%s251_s5] sm:$0xff] %v164_v41  }

// kernel: image_encoder_forward.15
= control target key start
LH: loop header
LB: loop body
LE: loop exit
PB: predicated region body
PF: predicated region fallthrough
CT: control target
= control target key end

     0   :  { %v124_v0 = vmov 0.0   ;;  %vm125_vm0 = vmmov 0   ;;  %vm48_vm1 = vcmask 261120   ;;  %s175_s1 = inlined_call_operand.vmem [shape: bf16[32,128], index: 1, kind: input, shape index: {}]   ;;  %s176_s0 = inlined_call_operand.vmem [shape: bf16[16,32], index: 0, kind: input, shape index: {}]   ;;  %s177_s2 = inlined_call_operand.vmem [shape: f32[1,128], index: 2, kind: input, shape index: {}]   ;;  %s178_s3 = inlined_call_operand.vmem [shape: f32[16,128], index: 3, kind: input, shape index: {}]   ;;  %s179_s4 = inlined_call_operand.vmem [shape: f32[16,128], index: 4, kind: output, shape index: {}]  }
   0x1   :  { %111 = vmatprep.subr.bf16.mxu0 %v124_v0  ;;  %v121_v1 = vld [vmem:[%s175_s1] sm:$0xff]   ;;  %115 = vmatprep.mubr.msk.bf16.mxu0 %vm125_vm0, %v124_v0  ;;  %v122_v2 = vld [vmem:[%s175_s1 + $0x8] sm:$0xff]  }
   0x2   :  { %112 = vmatpush3.bf16.msra.mxu0 %v121_v1  ;;  %v123_v3 = vld [vmem:[%s176_s0] sm:$0xff]   ;;  %v94_v10 = vld [vmem:[%s178_s3 + $0x8] sm:$0xff] }
   0x3   :  { %113 = vmatprep.subr.bf16.mxu0 %v124_v0  ;;  %v103_v4 = vld [vmem:[%s177_s2] ss:$0 sm:$0xff] }
   0x4   :  { %v93_v6 = vld [vmem:[%s178_s3] sm:$0xff] }
   0x6   :  { %114 = vmatpush3.bf16.msra.mxu0 %v122_v2 }
   0x9   :  { %116 = vmatmul.mubr.msk.bf16.vlgmr.msra.gmra.mrb[0].mxu0 %vm48_vm1, %v123_v3 }
  0xdc   :  { %v86_v5 = vpop.f32.mrb[0].mxu0 }
  0xdd   :  { %v87_v7 = vadd.f32 %v103_v4, %v86_v5  ;;  %v117_v8 = vpop.f32.mrb[1].mxu0 }
  0xde   :  { %v89_v9 = vpop.f32.mrb[2].mxu0 }
  0xdf   :  { %v95_v11 = vadd.f32 %v93_v6, %v87_v7  ;;  %v90_v12 = vadd.f32 %v103_v4, %v89_v9  ;;  %v118_v13 = vpop.f32.mrb[3].mxu0 }
  0xe1   :  { %97 = vst [vmem:[%s179_s4] sm:$0xff] %v95_v11  ;;  %v96_v14 = vadd.f32 %v94_v10, %v90_v12 }
  0xe3   :  { %98 = vst [vmem:[%s179_s4 + $0x8] sm:$0xff] %v96_v14 }

// kernel: image_encoder_forward.16
= control target key start
LH: loop header
LB: loop body
LE: loop exit
PB: predicated region body
PF: predicated region fallthrough
CT: control target
= control target key end

     0   :  { %vm36_vm0 = vcmask 261120   ;;  %v388_v15 = vmov 0.0   ;;  %vm389_vm1 = vmmov 0   ;;  %s507_s0 = inlined_call_operand.vmem [shape: f32[16,32], index: 0, kind: input, shape index: {}, may-alias: {0,7}]   ;;  %s508_s3 = inlined_call_operand.vmem [shape: bf16[32,128], index: 3, kind: input, shape index: {}]   ;;  %s509_s1 = inlined_call_operand.vmem [shape: f32[1,32], index: 1, kind: input, shape index: {}]   ;;  %s510_s2 = inlined_call_operand.vmem [shape: f32[1,32], index: 2, kind: input, shape index: {}]   ;;  %s511_s5 = inlined_call_operand.vmem [shape: bf16[128,32], index: 5, kind: input, shape index: {}]   ;;  %s512_s4 = inlined_call_operand.vmem [shape: f32[1,128], index: 4, kind: input, shape index: {}]   ;;  %s513_s6 = inlined_call_operand.vmem [shape: f32[1,32], index: 6, kind: input, shape index: {}]   ;;  %s514_s7 = inlined_call_operand.vmem [shape: f32[16,32], index: 7, kind: input, shape index: {}, may-alias: {0,7}]   ;;  %s515_s8 = inlined_call_operand.vmem [shape: f32[16,32], index: 8, kind: output, shape index: {}]  }
   0x1   :  { %v34_v0 = vld [vmem:[%s507_s0] sm:$0xff]  ;;  %v35_v1 = vld [vmem:[%s507_s0 + $0x8] sm:$0xff]  ;;  %336 = vmatprep.subr.bf16.mxu0 %v388_v15  ;;  %84 = vst.msk [vmem:[#allocation3] sm:$0xff] %vm36_vm0, %v388_v15  ;;  %85 = vst.msk [vmem:[#allocation3 + $0x8] sm:$0xff] %vm36_vm0, %v388_v15  ;;  %344 = vmatprep.subr.bf16.mxu1 %v388_v15 }
   0x2   :  { %v37_v2 = vsel %vm36_vm0, %v34_v0, 0.0  ;;  %v40_v3 = vsel %vm36_vm0, %v35_v1, 0.0  ;;  %v366_v14 = vld [vmem:[%s508_s3] sm:$0xff]   ;;  %v367_v16 = vld [vmem:[%s508_s3 + $0x8] sm:$0xff]   ;;  %340 = vmatprep.mubr.msk.bf16.mxu0 %vm389_vm1, %v388_v15  ;;  %360 = vmatprep.mubr.msk.bf16.mxu1 %vm389_vm1, %v388_v15  ;;  %v370_v37 = vld [vmem:[%s511_s5 + $0x10] sm:$0xff]  }
   0x3   :  { %38 = vadd.xlane.f32.xlu0 %v37_v2  ;;  %337 = vmatpush3.bf16.msra.mxu0 %v366_v14  ;;  %v307_v25 = vld [vmem:[%s509_s1] ss:$0 sm:$0xff]  ;;  %v369_v36 = vld [vmem:[%s511_s5 + $0x8] sm:$0xff]   ;;  %v371_v38 = vld [vmem:[%s511_s5 + $0x18] sm:$0xff]  }
   0x4   :  { %338 = vmatprep.subr.bf16.mxu0 %v388_v15  ;;  %v308_v29 = vld [vmem:[%s510_s2] ss:$0 sm:$0xff]  ;;  %v373_v40 = vld [vmem:[%s511_s5 + $0x28] sm:$0xff]   ;;  %v374_v41 = vld [vmem:[%s511_s5 + $0x30] sm:$0xff]  }
   0x5   :  { %v368_v35 = vld [vmem:[%s511_s5] sm:$0xff]   ;;  %v375_v42 = vld [vmem:[%s511_s5 + $0x38] sm:$0xff]  }
   0x6   :  { %345 = vmatpush3.bf16.msra.mxu1 %v368_v35  ;;  %v372_v39 = vld [vmem:[%s511_s5 + $0x20] sm:$0xff]  }
   0x7   :  { %41 = vadd.xlane.f32.xlu0 %v40_v3  ;;  %339 = vmatpush3.bf16.msra.mxu0 %v367_v16  ;;  %v309_v43 = vld [vmem:[%s512_s4] ss:$0 sm:$0xff] }
   0x8   :  { %346 = vmatprep.subr.bf16.mxu1 %v388_v15  ;;  %v171_v63 = vld [vmem:[#allocation3] sm:$0xff] }
   0xa   :  { %347 = vmatpush3.bf16.msra.mxu1 %v369_v36 }
   0xb   :  { %348 = vmatprep.subr.bf16.mxu1 %v388_v15 }
   0xe   :  { %349 = vmatpush3.bf16.msra.mxu1 %v370_v37 }
   0xf   :  { %350 = vmatprep.subr.bf16.mxu1 %v388_v15 }
  0x12   :  { %351 = vmatpush3.bf16.msra.mxu1 %v371_v38 }
  0x13   :  { %352 = vmatprep.subr.bf16.mxu1 %v388_v15 }
  0x16   :  { %353 = vmatpush3.bf16.msra.mxu1 %v372_v39 }
  0x17   :  { %354 = vmatprep.subr.bf16.mxu1 %v388_v15 }
  0x1a   :  { %355 = vmatpush3.bf16.msra.mxu1 %v373_v40 }
  0x1b   :  { %356 = vmatprep.subr.bf16.mxu1 %v388_v15 }
  0x1e   :  { %357 = vmatpush3.bf16.msra.mxu1 %v374_v41 }
  0x1f   :  { %358 = vmatprep.subr.bf16.mxu1 %v388_v15 }
  0x22   :  { %359 = vmatpush3.bf16.msra.mxu1 %v375_v42 }
  0x90   :  { %v39_v4 = vpop.xlane.xlu0 %38 }
  0x91   :  { %v44_v5 = vmul.f32 0.03125, %v39_v4 }
  0x93   :  { %v46_v6 = vsub.f32 %v34_v0, %v44_v5 }
  0x94   :  { %v42_v7 = vpop.xlane.xlu0 %41 }
  0x95   :  { %v45_v8 = vmul.f32 0.03125, %v42_v7  ;;  %v48_v9 = vmul.f32 %v46_v6, %v46_v6  ;;  %v323_v7 = vld [vmem:[%s513_s6] ss:$0 sm:$0xff] }
  0x97   :  { %v47_v10 = vsub.f32 %v35_v1, %v45_v8  ;;  %v50_v11 = vsel %vm36_vm0, %v48_v9, 0.0  ;;  %v172_v1 = vld [vmem:[#allocation3 + $0x8] sm:$0xff]  ;;  %v297_v9 = vld [vmem:[%s514_s7] sm:$0xff] }
  0x98   :  { %51 = vadd.xlane.f32.xlu1 %v50_v11 }
  0x99   :  { %v49_v12 = vmul.f32 %v47_v10, %v47_v10 }
  0x9b   :  { %v53_v13 = vsel %vm36_vm0, %v49_v12, 0.0  ;;  %v298_v12 = vld [vmem:[%s514_s7 + $0x8] sm:$0xff] }
  0x9c   :  { %54 = vadd.xlane.f32.xlu1 %v53_v13 }
 0x125   :  { %v52_v17 = vpop.xlane.xlu1 %51 }
 0x126   :  { %v56_v18 = vmul.f32 0.03125, %v52_v17 }
 0x128   :  { %v58_v19 = vadd.f32 1e-05, %v56_v18 }
 0x129   :  { %v55_v20 = vpop.xlane.xlu1 %54 }
 0x12a   :  { %376 = vrsqrt.f32 %v58_v19  ;;  %v57_v21 = vmul.f32 0.03125, %v55_v20 }
 0x12c   :  { %v59_v22 = vadd.f32 1e-05, %v57_v21 }
 0x12e   :  { %378 = vrsqrt.f32 %v59_v22 }
 0x134   :  { %v377_v23 = vpop.eup %376 }
 0x135   :  { %v62_v24 = vmul.f32 %v377_v23, %v46_v6 }
 0x137   :  { %v71_v27 = vmul.f32 %v307_v25, %v62_v24 }
 0x138   :  { %v379_v26 = vpop.eup %378 }
 0x139   :  { %v63_v28 = vmul.f32 %v379_v26, %v47_v10  ;;  %v80_v31 = vadd.f32 %v308_v29, %v71_v27 }
 0x13b   :  { %v72_v30 = vmul.f32 %v307_v25, %v63_v28 }
 0x13d   :  { %v81_v32 = vadd.f32 %v308_v29, %v72_v30 }
 0x13f   :  { %v82_v33 = vpack.c.bf16 %v81_v32, %v80_v31 }
 0x141   :  { %83 = vst.msk [vmem:[#allocation2] sm:$0xff] %vm36_vm0, %v82_v33 }
 0x148   :  { %v86_v34 = vld [vmem:[#allocation2] sm:$0xff] }
 0x149   :  { %341 = vmatmul.mubr.msk.bf16.vlgmr.msra.gmra.mrb[0].mxu0 %vm36_vm0, %v86_v34 }
 0x21c   :  { %v148_v44 = vpop.f32.mrb[0].mxu0 }
 0x21d   :  { %v149_v45 = vadd.f32 %v309_v43, %v148_v44  ;;  %v342_v46 = vpop.f32.mrb[1].mxu0 }
 0x21e   :  { %v151_v47 = vpop.f32.mrb[2].mxu0 }
 0x21f   :  { %v313_v48 = vmul.f32 -1.702, %v149_v45  ;;  %v152_v49 = vadd.f32 %v309_v43, %v151_v47  ;;  %v343_v50 = vpop.f32.mrb[3].mxu0 }
 0x221   :  { %v159_v51 = vmul.f32 1.442695, %v313_v48  ;;  %v314_v52 = vmul.f32 -1.702, %v152_v49 }
 0x223   :  { %380 = vpow2.f32 %v159_v51  ;;  %v161_v53 = vmul.f32 1.442695, %v314_v52 }
 0x225   :  { %382 = vpow2.f32 %v161_v53 }
 0x22d   :  { %v381_v54 = vpop.eup %380 }
 0x22e   :  { %v163_v55 = vadd.f32 1.0, %v381_v54 }
 0x22f   :  { %v383_v56 = vpop.eup %382 }
 0x230   :  { %384 = vrcp.f32 %v163_v55  ;;  %v164_v57 = vadd.f32 1.0, %v383_v56 }
 0x232   :  { %386 = vrcp.f32 %v164_v57 }
 0x23a   :  { %v385_v58 = vpop.eup %384 }
 0x23b   :  { %v169_v60 = vmul.f32 %v385_v58, %v149_v45 }
 0x23c   :  { %v387_v59 = vpop.eup %386 }
 0x23d   :  { %v170_v61 = vmul.f32 %v387_v59, %v152_v49 }
 0x23f   :  { %v173_v62 = vpack.c.bf16 %v170_v61, %v169_v60 }
 0x241   :  { %361 = vmatmul.mubr.bf16.vlgmr.msra.gmra.mrb[0].mxu1 %v173_v62 }
 0x314   :  { %v272_v0 = vpop.f32.mrb[0].mxu1 }
 0x315   :  { %v279_v2 = vadd.f32 %v272_v0, %v171_v63  ;;  %v362_v3 = vpop.f32.mrb[1].mxu1 }
 0x316   :  { %v275_v4 = vpop.f32.mrb[2].mxu1 }
 0x317   :  { %281 = vst.msk [vmem:[#allocation3] sm:$0xff] %vm36_vm0, %v279_v2  ;;  %v280_v5 = vadd.f32 %v275_v4, %v172_v1  ;;  %v363_v6 = vpop.f32.mrb[3].mxu1 }
 0x319   :  { %282 = vst.msk [vmem:[#allocation3 + $0x8] sm:$0xff] %vm36_vm0, %v280_v5 }
 0x31e   :  { %v286_v8 = vld [vmem:[#allocation3] sm:$0xff] }
 0x31f   :  { %v295_v10 = vadd.f32 %v323_v7, %v286_v8 }
 0x320   :  { %v287_v11 = vld [vmem:[#allocation3 + $0x8] sm:$0xff] }
 0x321   :  { %v299_v13 = vadd.f32 %v297_v9, %v295_v10  ;;  %v296_v14 = vadd.f32 %v323_v7, %v287_v11 }
 0x323   :  { %301 = vst.msk [vmem:[%s515_s8] sm:$0xff] %vm36_vm0, %v299_v13  ;;  %v300_v15 = vadd.f32 %v298_v12, %v296_v14 }
 0x325   :  { %302 = vst.msk [vmem:[%s515_s8 + $0x8] sm:$0xff] %vm36_vm0, %v300_v15 }

// kernel: image_encoder_forward.21
= control target key start
LH: loop header
LB: loop body
LE: loop exit
PB: predicated region body
PF: predicated region fallthrough
CT: control target
= control target key end

     0   :  { %vm15_vm0 = vcmask 261120   ;;  %s90_s0 = inlined_call_operand.vmem [shape: f32[8,32], index: 0, kind: input, shape index: {}]   ;;  %s91_s1 = inlined_call_operand.vmem [shape: f32[1,32], index: 1, kind: input, shape index: {}]   ;;  %s92_s2 = inlined_call_operand.vmem [shape: f32[1,32], index: 2, kind: input, shape index: {}]   ;;  %s93_s3 = inlined_call_operand.vmem [shape: f32[8,32], index: 3, kind: output, shape index: {}]  }
   0x1   :  { %v14_v0 = vld [vmem:[%s90_s0] sm:$0xff] }
   0x2   :  { %v16_v1 = vsel %vm15_vm0, %v14_v0, 0.0  ;;  %v51_v11 = vld [vmem:[%s91_s1] ss:$0 sm:$0xff] }
   0x3   :  { %17 = vadd.xlane.f32.xlu0 %v16_v1  ;;  %v52_v13 = vld [vmem:[%s92_s2] ss:$0 sm:$0xff] }
  0x90   :  { %v18_v2 = vpop.xlane.xlu0 %17 }
  0x91   :  { %v20_v3 = vmul.f32 0.03125, %v18_v2 }
  0x93   :  { %v21_v4 = vsub.f32 %v14_v0, %v20_v3 }
  0x95   :  { %v22_v5 = vmul.f32 %v21_v4, %v21_v4 }
  0x97   :  { %v23_v6 = vsel %vm15_vm0, %v22_v5, 0.0 }
  0x98   :  { %24 = vadd.xlane.f32.xlu0 %v23_v6 }
 0x125   :  { %v25_v7 = vpop.xlane.xlu0 %24 }
 0x126   :  { %v26_v8 = vmul.f32 0.03125, %v25_v7 }
 0x128   :  { %v27_v9 = vadd.f32 1e-05, %v26_v8 }
 0x12a   :  { %53 = vrsqrt.f32 %v27_v9 }
 0x134   :  { %v54_v10 = vpop.eup %53 }
 0x135   :  { %v29_v12 = vmul.f32 %v54_v10, %v21_v4 }
 0x137   :  { %v37_v14 = vmul.f32 %v51_v11, %v29_v12 }
 0x139   :  { %v45_v15 = vadd.f32 %v52_v13, %v37_v14 }
 0x13b   :  { %46 = vst.msk [vmem:[%s93_s3] sm:$0xff] %vm15_vm0, %v45_v15 }

</bundles_post_ra>
